<compile_context>
chip_gen: v5e
topology: v5e:2x2
jax: 0.10.0
libtpu: 0.0.40
codegen_flags: <defaults>
</compile_context>

<pallas_src>
import functools
import math

import jax
import jax.numpy as jnp
from jax import lax
from jax.experimental import pallas as pl
from jax.experimental.pallas import tpu as pltpu


_MIN_C = 8            # pad tiny channel counts up to this
_OUTPUT_NC = 2
_EPS = 1e-5


def _rup(x, m):
    return -(-x // m) * m


@functools.lru_cache(maxsize=None)
def _vmem_capacity_bytes():
    # Generation-aware: ~128 MiB on v5e/v6e, ~64 MiB per TC on v7x.  Fall back to the
    # conservative v7x figure if the query is unavailable.
    try:
        return int(pltpu.get_tpu_info().vmem_capacity_bytes)
    except Exception:
        return 64 * 1024 * 1024


def _vmem_budget():
    return _vmem_capacity_bytes() // 3


def _vmem_limit():
    cap = _vmem_capacity_bytes()
    return min(int(cap * 0.75), cap - (16 << 20))


def _activate(z, act):
    if act == "lrelu":
        return jnp.where(z > 0, z, 0.2 * z)       # LeakyReLU(0.2)
    if act == "relu":
        return jnp.maximum(z, 0.0)
    return z


# ----------------------------------------------------------------------------
# Pallas kernel: fused 3x3 conv (+ deferred-InstanceNorm input transform,
# + bias/activation or per-tile norm statistics)
# ----------------------------------------------------------------------------
def _conv3x3_kernel(*refs, plan, wp, th, ih, iw, cout, use_bias, out_act, emit_stats):
    """One (image, row-tile) grid cell of a 3x3 'same' conv over channel groups.

    Per group g (a channel slice of the logical conv input), in order:
      body_ref : (1, TH, wp, Cin_g) bf16   padded rows [t*TH, t*TH+TH)
      halo_ref : (1, 8,  wp, Cin_g) bf16   padded rows [(t+1)*TH, (t+1)*TH+8)
      w_ref    : (3, 3*Cin_g, Cout) bf16   ky-major, (kx, ci)-flattened weights
      aff_ref  : (1, 2, Cin_g)      f32    producing layer's per-image InstanceNorm
                                           (scale, shift), only if deferred norm
    then optionally bias_ref (1, Cout) f32, followed by
      out_ref   : (1, TH*wp, Cout)
      stats_ref : (1, 1, 2, Cout) f32      (sum, sum-of-squares) over valid positions
    """
    t = pl.program_id(1)
    tqo = th * wp
    lw = tqo + 2 * wp

    idx = 0
    acc = None
    for (cin, has_aff, in_act) in plan:
        body_ref, halo_ref, w_ref = refs[idx], refs[idx + 1], refs[idx + 2]
        idx += 3
        aff_ref = None
        if has_aff:
            aff_ref = refs[idx]
            idx += 1

        x3 = jnp.concatenate([body_ref[0], halo_ref[0]], axis=0)   # (TH+8, wp, cin)

        if has_aff:
            # Deferred InstanceNorm + activation of the *producing* layer, masked so the
            # conv's zero padding (and junk columns/rows) stays exactly zero.
            r = lax.broadcasted_iota(jnp.int32, (th + 8, wp, 1), 0) + t * th
            c = lax.broadcasted_iota(jnp.int32, (th + 8, wp, 1), 1)
            valid = jnp.logical_and(jnp.logical_and(r >= 1, r <= ih),
                                    jnp.logical_and(c >= 1, c <= iw))
            scale = aff_ref[0, 0:1, :]                              # (1, cin)
            shift = aff_ref[0, 1:2, :]
            z = _activate(x3.astype(jnp.float32) * scale + shift, in_act)
            x3 = jnp.where(valid, z, 0.0).astype(jnp.bfloat16)

        # Flatten rows (wp is a multiple of 16 -> layout-preserving) and build the
        # kx-widened slab: wide[i, kx*cin + ci] = flat[i + kx, ci]  ->  K = 3*cin.
        flat = x3.reshape((th + 8) * wp, cin)
        wide = jnp.concatenate([flat[0:lw], flat[1:lw + 1], flat[2:lw + 2]], axis=-1)

        # 3 MXU matmuls (one per ky) at sublane-aligned offsets {0, wp, 2*wp}.
        for ky in range(3):
            d = jnp.dot(wide[ky * wp: ky * wp + tqo, :], w_ref[ky],
                        preferred_element_type=jnp.float32)
            acc = d if acc is None else acc + d

    if use_bias:
        acc = acc + refs[idx][...]
        idx += 1
    out_ref = refs[idx]
    idx += 1

    if not emit_stats:
        out_ref[0] = _activate(acc, out_act).astype(out_ref.dtype)
        return

    # Pre-norm output + single-pass per-tile statistics over the valid H x W positions.
    out_ref[0] = acc.astype(out_ref.dtype)
    stats_ref = refs[idx]
    acc3 = acc.reshape(th, wp, cout)
    r = lax.broadcasted_iota(jnp.int32, (th, wp, 1), 0) + t * th
    c = lax.broadcasted_iota(jnp.int32, (th, wp, 1), 1)
    m = jnp.logical_and(r < ih, c < iw).astype(jnp.float32)
    am = acc3 * m
    s1 = jnp.sum(jnp.sum(am, axis=0), axis=0, keepdims=True)          # (1, Cout)
    s2 = jnp.sum(jnp.sum(am * acc3, axis=0), axis=0, keepdims=True)   # (1, Cout)
    stats_ref[0, 0, 0:1, :] = s1
    stats_ref[0, 0, 1:2, :] = s2


# ----------------------------------------------------------------------------
# VMEM-aware row tiling
# ----------------------------------------------------------------------------
def _estimate_vmem_bytes(th, wp, group_cins, cout, out_itemsize, emit_stats):
    """Layout-aware per-grid-step VMEM estimate (128-lane / sublane-tile padding)."""
    tqo = th * wp
    lw = tqo + 2 * wp
    total = 0
    for cin, has_aff in group_cins:
        cl = _rup(cin, 128)
        total += 2 * (th * wp * cl * 2)              # body block, double-buffered, bf16
        total += 2 * (8 * wp * cl * 2)               # halo block
        total += 2 * (3 * _rup(3 * cin, 16) * _rup(cout, 128) * 2)   # weights
        total += 2 * (8 * cl * 4)                    # affine (padded)
        slab = (th + 8) * wp * cl
        total += slab * 2 + (slab * 4 if has_aff else 0)             # slab temps
        total += 2 * (lw * _rup(3 * cin, 128) * 2)   # kx-widened slab + shifted slices
    total += _rup(tqo, 8) * _rup(cout, 128) * 4 * (2 if emit_stats else 1)   # acc (+mask)
    total += 2 * (_rup(tqo, 16) * _rup(cout, 128) * out_itemsize)            # out block
    total += 2 * (8 * _rup(cout, 128) * 4)                                   # stats
    return int(total * 1.2)                           # slack for regalloc / iota temps


def _pick_tile_rows(h_img, wp, group_cins, cout, out_itemsize, emit_stats, max_rows):
    budget = _vmem_budget()
    th = _rup(h_img if max_rows is None else min(h_img, max_rows), 8)
    th = max(th, 8)
    while th > 8 and _estimate_vmem_bytes(th, wp, group_cins, cout, out_itemsize,
                                          emit_stats) > budget:
        th = max(8, _rup(th // 2, 8))
    return th


# ----------------------------------------------------------------------------
# Conv wrapper
# ----------------------------------------------------------------------------
def conv3x3_fused(groups, bias=None, *, emit_stats, use_bias=False, out_act="none",
                  out_dtype=jnp.bfloat16, max_rows=None):
    """3x3 'same' conv (stride 1, pad 1) over the channel-concat of `groups`.

    groups : list of (x_nhwc, w_taps, affine, in_act)
        x_nhwc : (N, H, W, Cin_g)       activation (used as bf16)
        w_taps : (3, 3*Cin_g, Cout)     bf16 weights for this channel slice
        affine : (N, 2, Cin_g) f32 or None -- producing layer's per-image InstanceNorm
                 (scale, shift), applied with `in_act` to the loaded input in-kernel
        in_act : activation deferred from the producing layer
    Returns y (N, H, W, Cout)  [, affine (N, 2, Cout) if emit_stats].
    """
    assert not (use_bias and emit_stats)     # bias cancels exactly under InstanceNorm
    N, H, W, _ = groups[0][0].shape
    for g in groups:
        assert g[0].shape[:3] == (N, H, W)
    cout = groups[0][1].shape[-1]
    wp = _rup(W + 2, 16)                     # bf16 sublane-tile aligned flattened width
    out_itemsize = jnp.dtype(out_dtype).itemsize

    plan, group_cins = [], []
    for (_, w, aff, in_act) in groups:
        cin = w.shape[1] // 3
        plan.append((cin, aff is not None, in_act))
        group_cins.append((cin, aff is not None))

    th = _pick_tile_rows(H, wp, group_cins, cout, out_itemsize, emit_stats, max_rows)
    ht = -(-H // th)
    hp = ht * th
    rtot = hp + 8
    tqo = th * wp
    thb = th // 8

    args, in_specs = [], []
    for (x, w, aff, _), (cin, _) in zip(groups, group_cins):
        if x.shape[-1] < cin:                # tiny-Cin zero padding (first conv only)
            x = jnp.pad(x, ((0, 0), (0, 0), (0, 0), (0, cin - x.shape[-1])))
        # One padded, width-extended copy; read through two BlockSpec streams
        # (non-overlapping body rows + an 8-row halo) -- no per-tile duplication in HBM.
        xp = jnp.pad(x.astype(jnp.bfloat16),
                     ((0, 0), (1, rtot - 1 - H), (1, wp - 1 - W), (0, 0)))
        args += [xp, xp, w.astype(jnp.bfloat16)]
        in_specs += [
            pl.BlockSpec((1, th, wp, cin), lambda n, t: (n, t, 0, 0)),
            pl.BlockSpec((1, 8, wp, cin), lambda n, t: (n, (t + 1) * thb, 0, 0)),
            pl.BlockSpec((3, 3 * cin, cout), lambda n, t: (0, 0, 0)),
        ]
        if aff is not None:
            args.append(aff.astype(jnp.float32))
            in_specs.append(pl.BlockSpec((1, 2, cin), lambda n, t: (n, 0, 0)))
    if use_bias:
        args.append(bias.reshape(1, cout).astype(jnp.float32))
        in_specs.append(pl.BlockSpec((1, cout), lambda n, t: (0, 0)))

    out_shape = [jax.ShapeDtypeStruct((N, hp * wp, cout), out_dtype)]
    out_specs = [pl.BlockSpec((1, tqo, cout), lambda n, t: (n, t, 0))]
    if emit_stats:
        out_shape.append(jax.ShapeDtypeStruct((N, ht, 2, cout), jnp.float32))
        out_specs.append(pl.BlockSpec((1, 1, 2, cout), lambda n, t: (n, t, 0, 0)))

    flops = 2 * N * ht * tqo * cout * sum(9 * c for c, _ in group_cins)
    bytes_accessed = int(sum(int(a.size) * a.dtype.itemsize for a in args)
                         + N * hp * wp * cout * out_itemsize)

    kernel = functools.partial(
        _conv3x3_kernel, plan=tuple(plan), wp=wp, th=th, ih=H, iw=W, cout=cout,
        use_bias=use_bias, out_act=out_act, emit_stats=emit_stats)

    result = pl.pallas_call(
        kernel,
        grid=(N, ht),
        in_specs=in_specs,
        out_specs=tuple(out_specs) if emit_stats else out_specs[0],
        out_shape=tuple(out_shape) if emit_stats else out_shape[0],
        compiler_params=pltpu.CompilerParams(
            dimension_semantics=("parallel", "parallel"),
            vmem_limit_bytes=_vmem_limit()),
        cost_estimate=pl.CostEstimate(flops=flops, transcendentals=0,
                                      bytes_accessed=bytes_accessed),
    )(*args)

    y = result[0] if emit_stats else result
    y = y.reshape(N, hp, wp, cout)[:, :H, :W, :]     # drop junk columns / padded rows
    if not emit_stats:
        return y

    # Combine per-tile partial sums into the per-image InstanceNorm affine.
    # (Single-pass E[x^2]-E[x]^2 in f32; post-norm activations keep |mean| ~ std so
    #  cancellation is benign here; clamped at 0 for safety.)
    stats = result[1]
    s = jnp.sum(stats, axis=1)                       # (N, 2, Cout)
    inv_count = 1.0 / float(H * W)
    mean = s[:, 0] * inv_count
    var = jnp.maximum(s[:, 1] * inv_count - mean * mean, 0.0)
    scale = lax.rsqrt(var + _EPS)
    affine = jnp.stack([scale, -mean * scale], axis=1)   # (N, 2, Cout)
    return y, affine


# ----------------------------------------------------------------------------
# Small JAX glue ops (pooling / upsampling / deferred norm application)
# ----------------------------------------------------------------------------
def maxpool2x2(x):
    # Applied to *pre-norm* activations: per-channel (scale>0) affine + monotone
    # activation commute exactly with max, so deferring the norm past the pool is exact.
    N, H, W, C = x.shape
    x = x[:, :(H // 2) * 2, :(W // 2) * 2, :]
    return x.reshape(N, H // 2, 2, W // 2, 2, C).max(axis=(2, 4))


def apply_affine_act(x, affine, act):
    """Per-(image, channel) InstanceNorm scale/shift + activation (plain-JAX glue;
    XLA fuses it into the consumer, e.g. the bilinear upsample)."""
    s = affine[:, 0][:, None, None, :]
    b = affine[:, 1][:, None, None, :]
    return _activate(x.astype(jnp.float32) * s + b, act)


def _upsample_axis_2x(v, axis, in_size):
    if in_size == 1:
        return jnp.repeat(v, 2, axis=axis)
    out_size = 2 * in_size
    src = jnp.arange(out_size, dtype=jnp.float32) * (in_size - 1) / (out_size - 1)
    lo = jnp.clip(jnp.floor(src).astype(jnp.int32), 0, in_size - 2)
    frac = src - lo.astype(jnp.float32)
    shape = [1] * v.ndim
    shape[axis] = out_size
    frac = frac.reshape(shape)
    a = jnp.take(v, lo, axis=axis).astype(jnp.float32)
    b = jnp.take(v, lo + 1, axis=axis).astype(jnp.float32)
    return a * (1.0 - frac) + b * frac


def upsample_bilinear_2x(x):
    # Bilinear, align_corners=True (nn.UpsamplingBilinear2d): gather + lerp, O(1)/output.
    N, H, W, C = x.shape
    y = _upsample_axis_2x(x, 1, H)
    y = _upsample_axis_2x(y, 2, W)
    return y


# ----------------------------------------------------------------------------
# Parameters (deterministic synthetic init).  PyTorch Conv2d weight [Cout, Cin, 3, 3]
# corresponds to HWIO [3, 3, Cin, Cout] here (transpose (2, 3, 1, 0)); tiny channel dims
# are zero-padded (Cin 2->8 for the first conv, Cout 2->8 for the final conv).
# ----------------------------------------------------------------------------
_CONV_SPECS = [
    ("d1a", 2, 32), ("d1b", 32, 32),          # down1
    ("d2a", 32, 64), ("d2b", 64, 64),         # down2
    ("mda", 64, 128), ("mdb", 128, 64),       # middle
    ("u1a", 128, 64), ("u1b", 64, 32),        # up1 (input = cat(conv2, upsample(middle)))
    ("u2a", 64, 32), ("u2b", 32, 32),         # up2 (input = cat(conv1, upsample(up1)))
    ("fin", 32, 2),                           # final_conv
]


def init_params(key):
    params = {}
    keys = jax.random.split(key, len(_CONV_SPECS))
    for k, (name, cin, cout) in zip(keys, _CONV_SPECS):
        kw, kb = jax.random.split(k)
        w = jax.random.normal(kw, (3, 3, cin, cout), jnp.float32) / math.sqrt(9 * cin)
        b = jax.random.normal(kb, (cout,), jnp.float32) * 0.01
        cin_e, cout_e = max(cin, _MIN_C), max(cout, _MIN_C)
        we = jnp.zeros((3, 3, cin_e, cout_e), jnp.float32).at[:, :, :cin, :cout].set(w)
        be = jnp.zeros((cout_e,), jnp.float32).at[:cout].set(b)
        params[name + "_w"] = we.astype(jnp.bfloat16)
        params[name + "_b"] = be
    return params


def _taps(w_hwio, lo, hi):
    """Channel slice [lo, hi) of an HWIO weight, flattened to (3, 3*Cin_g, Cout)."""
    cout = w_hwio.shape[-1]
    return w_hwio[:, :, lo:hi, :].reshape(3, 3 * (hi - lo), cout)


# ----------------------------------------------------------------------------
# Full forward pass (matches Care_net.forward; NCHW in / NCHW out)
# ----------------------------------------------------------------------------
def care_net_forward(params, x_nchw):
    p = params
    x = jnp.transpose(x_nchw, (0, 2, 3, 1))                       # NCHW -> NHWC

    # down1: conv+bias+lrelu ; conv -> IN -> lrelu (norm+act deferred to consumers)
    h = conv3x3_fused([(x, _taps(p["d1a_w"], 0, 8), None, "none")], p["d1a_b"],
                      emit_stats=False, use_bias=True, out_act="lrelu")
    conv1, aff1 = conv3x3_fused([(h, _taps(p["d1b_w"], 0, 32), None, "none")],
                                emit_stats=True)
    d1 = maxpool2x2(conv1)                    # pooled pre-norm (exact monotone commute)

    # down2
    h, aff = conv3x3_fused([(d1, _taps(p["d2a_w"], 0, 32), aff1, "lrelu")],
                           emit_stats=True)
    conv2, aff2 = conv3x3_fused([(h, _taps(p["d2b_w"], 0, 64), aff, "lrelu")],
                                emit_stats=True)
    d2 = maxpool2x2(conv2)

    # middle
    h, aff = conv3x3_fused([(d2, _taps(p["mda_w"], 0, 64), aff2, "lrelu")],
                           emit_stats=True)
    middle, aff_m = conv3x3_fused([(h, _taps(p["mdb_w"], 0, 128), aff, "lrelu")],
                                  emit_stats=True)

    # up1: norm+lrelu folded into the XLA-fused bilinear upsample; skip connection enters
    # the conv as a second channel group (no concatenated tensor materialised in HBM).
    up = upsample_bilinear_2x(apply_affine_act(middle, aff_m, "lrelu"))
    h, aff = conv3x3_fused([(conv2, _taps(p["u1a_w"], 0, 64), aff2, "lrelu"),
                            (up, _taps(p["u1a_w"], 64, 128), None, "none")],
                           emit_stats=True)
    up1, aff_u1 = conv3x3_fused([(h, _taps(p["u1b_w"], 0, 64), aff, "relu")],
                                emit_stats=True)

    # up2
    up = upsample_bilinear_2x(apply_affine_act(up1, aff_u1, "relu"))
    h, aff = conv3x3_fused([(conv1, _taps(p["u2a_w"], 0, 32), aff1, "lrelu"),
                            (up, _taps(p["u2a_w"], 32, 64), None, "none")],
                           emit_stats=True)
    up2, aff = conv3x3_fused([(h, _taps(p["u2b_w"], 0, 32), aff, "relu")],
                             emit_stats=True)

    # final conv: deferred relu+norm of u2b applied to its input; bias; no activation.
    out = conv3x3_fused([(up2, _taps(p["fin_w"], 0, 32), aff, "relu")], p["fin_b"],
                        emit_stats=False, use_bias=True, out_act="none")
    out = out[..., :_OUTPUT_NC].astype(jnp.float32)
    return jnp.transpose(out, (0, 3, 1, 2))                       # NHWC -> NCHW


# ----------------------------------------------------------------------------
# Reference helper (XLA) for the unit checks
# ----------------------------------------------------------------------------
def _ref_conv(x, w_hwio, b=None):
    y = lax.conv_general_dilated(
        x.astype(jnp.float32), w_hwio.astype(jnp.float32), (1, 1), "SAME",
        dimension_numbers=("NHWC", "HWIO", "NHWC"))
    return y if b is None else y + b


if __name__ == "__main__":
    key = jax.random.PRNGKey(0)
    pkey, xkey, akey, bkey, mkey = jax.random.split(key, 5)
    params = init_params(pkey)

    # --- unit checks of the conv kernel against a plain-XLA reference ----------------
    xs = jax.random.normal(xkey, (1, 16, 16, 32), jnp.bfloat16)
    w1, b1 = params["d1b_w"], params["d1b_b"]                    # 32 -> 32

    # plain mode (bias + activation applied in-kernel)
    y_k = conv3x3_fused([(xs, _taps(w1, 0, 32), None, "none")], b1,
                        emit_stats=False, use_bias=True, out_act="lrelu")
    y_r = _activate(_ref_conv(xs, w1, b1), "lrelu")
    assert bool(jnp.allclose(y_k.astype(jnp.float32), y_r, atol=2e-2, rtol=2e-2))

    # emit_stats mode: pre-norm output + per-image InstanceNorm affine; single-tile vs
    # row-tiled (max_rows=8 forces the halo/body multi-tile path) must agree.
    y1, a1 = conv3x3_fused([(xs, _taps(w1, 0, 32), None, "none")], emit_stats=True)
    y2, a2 = conv3x3_fused([(xs, _taps(w1, 0, 32), None, "none")], emit_stats=True,
                           max_rows=8)
    z1 = apply_affine_act(y1, a1, "lrelu")
    z2 = apply_affine_act(y2, a2, "lrelu")
    c_r = _ref_conv(xs, w1)
    mu = c_r.mean(axis=(1, 2), keepdims=True)
    var = ((c_r - mu) ** 2).mean(axis=(1, 2), keepdims=True)
    z_r = _activate((c_r - mu) * lax.rsqrt(var + _EPS), "lrelu")
    assert bool(jnp.allclose(z1, z_r, atol=3e-2, rtol=3e-2))
    assert bool(jnp.allclose(z1, z2, atol=3e-2, rtol=3e-2))

    # deferred norm + activation applied inside the *consuming* conv (masked padding)
    w2 = params["d2a_w"]                                         # 32 -> 64
    y3, _ = conv3x3_fused([(y1, _taps(w2, 0, 32), a1, "lrelu")], emit_stats=True)
    y3_r = _ref_conv(z_r, w2)
    assert bool(jnp.allclose(y3.astype(jnp.float32), y3_r, atol=5e-2, rtol=5e-2))

    # two input channel groups (skip-connection path without an HBM concat)
    xa = jax.random.normal(akey, (1, 16, 16, 32), jnp.bfloat16)
    xb = jax.random.normal(bkey, (1, 16, 16, 32), jnp.bfloat16)
    w3, b3 = params["u2a_w"], params["u2a_b"]                    # 64 -> 32
    y4 = conv3x3_fused([(xa, _taps(w3, 0, 32), None, "none"),
                        (xb, _taps(w3, 32, 64), None, "none")], b3,
                       emit_stats=False, use_bias=True, out_act="none")
    y4_r = _ref_conv(jnp.concatenate([xa, xb], axis=-1), w3, b3)
    assert bool(jnp.allclose(y4.astype(jnp.float32), y4_r, atol=2e-2, rtol=2e-2))

    # --- full forward pass (input_nc=2): (batch=2, channels=2, 16, 16) ---------------
    x = jax.random.normal(mkey, (2, 2, 16, 16), jnp.float32)
    fwd = jax.jit(care_net_forward)
    y = fwd(params, x)
    jax.block_until_ready(y)
    assert y.shape == (2, 2, 16, 16), y.shape
    assert bool(jnp.all(jnp.isfinite(y)))

    print("KERNEL_OK")
</pallas_src>

<mosaic_0001>
module attributes {stable_mosaic.version = 11 : i64} {
  func.func @_conv3x3_kernel(%arg0: i32, %arg1: i32, %arg2: memref<1x16x32x32xbf16, #tpu.memory_space<vmem>>, %arg3: memref<1x8x32x32xbf16, #tpu.memory_space<vmem>>, %arg4: memref<3x96x32xbf16, #tpu.memory_space<vmem>>, %arg5: memref<1x32xf32, #tpu.memory_space<vmem>>, %arg6: memref<1x512x32xbf16, #tpu.memory_space<vmem>>) attributes {dimension_semantics = [#tpu.dimension_semantics<parallel>, #tpu.dimension_semantics<parallel>], iteration_bounds = array<i64: 1, 1>, scalar_prefetch = 0 : i64, scratch_operands = 0 : i64, tpu.core_type = #tpu.core_type<tc>, window_params = [{transform_indices = @transform_0, window_bounds = array<i64: 1, 16, 32, 32>}, {transform_indices = @transform_1, window_bounds = array<i64: 1, 8, 32, 32>}, {pipeline_mode = #tpu.pipeline_mode<synchronous>, transform_indices = @transform_2, window_bounds = array<i64: 3, 96, 32>}, {pipeline_mode = #tpu.pipeline_mode<synchronous>, transform_indices = @transform_3, window_bounds = array<i64: 1, 32>}, {transform_indices = @transform_4, window_bounds = array<i64: 1, 512, 32>}]} {
    %c0 = arith.constant 0 : index
    %c0_0 = arith.constant 0 : index
    %c0_1 = arith.constant 0 : index
    %c0_2 = arith.constant 0 : index
    %0 = vector.load %arg2[%c0, %c0_0, %c0_1, %c0_2] : memref<1x16x32x32xbf16, #tpu.memory_space<vmem>>, vector<1x16x32x32xbf16>
    %1 = vector.shape_cast %0 : vector<1x16x32x32xbf16> to vector<16x32x32xbf16>
    %c0_3 = arith.constant 0 : index
    %c0_4 = arith.constant 0 : index
    %c0_5 = arith.constant 0 : index
    %c0_6 = arith.constant 0 : index
    %2 = vector.load %arg3[%c0_3, %c0_4, %c0_5, %c0_6] : memref<1x8x32x32xbf16, #tpu.memory_space<vmem>>, vector<1x8x32x32xbf16>
    %3 = vector.shape_cast %2 : vector<1x8x32x32xbf16> to vector<8x32x32xbf16>
    %4 = tpu.concatenate %1, %3 in 0 : vector<16x32x32xbf16>, vector<8x32x32xbf16> -> vector<24x32x32xbf16>
    %5 = vector.shape_cast %4 : vector<24x32x32xbf16> to vector<768x32xbf16>
    %6 = vector.extract_strided_slice %5 {offsets = [0, 0], sizes = [576, 32], strides = [1, 1]} : vector<768x32xbf16> to vector<576x32xbf16>
    %7 = vector.extract_strided_slice %5 {offsets = [1, 0], sizes = [576, 32], strides = [1, 1]} : vector<768x32xbf16> to vector<576x32xbf16>
    %8 = vector.extract_strided_slice %5 {offsets = [2, 0], sizes = [576, 32], strides = [1, 1]} : vector<768x32xbf16> to vector<576x32xbf16>
    %9 = tpu.concatenate %6, %7, %8 in 1 : vector<576x32xbf16>, vector<576x32xbf16>, vector<576x32xbf16> -> vector<576x96xbf16>
    %10 = vector.extract_strided_slice %9 {offsets = [0, 0], sizes = [512, 96], strides = [1, 1]} : vector<576x96xbf16> to vector<512x96xbf16>
    %c0_7 = arith.constant 0 : index
    %c0_8 = arith.constant 0 : index
    %c0_9 = arith.constant 0 : index
    %11 = vector.load %arg4[%c0_7, %c0_8, %c0_9] : memref<3x96x32xbf16, #tpu.memory_space<vmem>>, vector<1x96x32xbf16>
    %12 = vector.shape_cast %11 : vector<1x96x32xbf16> to vector<96x32xbf16>
    %cst = arith.constant dense<0.000000e+00> : vector<512x32xf32>
    %13 = tpu.matmul %10, %12, %cst {dimension_numbers = #tpu.dot_dimension_numbers<[1], [0], [0], [1], [0, 0, 1, 1], [], []>} : vector<512x96xbf16>, vector<96x32xbf16>, vector<512x32xf32> -> vector<512x32xf32>
    %14 = vector.extract_strided_slice %9 {offsets = [32, 0], sizes = [512, 96], strides = [1, 1]} : vector<576x96xbf16> to vector<512x96xbf16>
    %c1 = arith.constant 1 : index
    %c0_10 = arith.constant 0 : index
    %c0_11 = arith.constant 0 : index
    %15 = vector.load %arg4[%c1, %c0_10, %c0_11] : memref<3x96x32xbf16, #tpu.memory_space<vmem>>, vector<1x96x32xbf16>
    %16 = vector.shape_cast %15 : vector<1x96x32xbf16> to vector<96x32xbf16>
    %cst_12 = arith.constant dense<0.000000e+00> : vector<512x32xf32>
    %17 = tpu.matmul %14, %16, %cst_12 {dimension_numbers = #tpu.dot_dimension_numbers<[1], [0], [0], [1], [0, 0, 1, 1], [], []>} : vector<512x96xbf16>, vector<96x32xbf16>, vector<512x32xf32> -> vector<512x32xf32>
    %18 = arith.addf %13, %17 : vector<512x32xf32>
    %19 = vector.extract_strided_slice %9 {offsets = [64, 0], sizes = [512, 96], strides = [1, 1]} : vector<576x96xbf16> to vector<512x96xbf16>
    %c2 = arith.constant 2 : index
    %c0_13 = arith.constant 0 : index
    %c0_14 = arith.constant 0 : index
    %20 = vector.load %arg4[%c2, %c0_13, %c0_14] : memref<3x96x32xbf16, #tpu.memory_space<vmem>>, vector<1x96x32xbf16>
    %21 = vector.shape_cast %20 : vector<1x96x32xbf16> to vector<96x32xbf16>
    %cst_15 = arith.constant dense<0.000000e+00> : vector<512x32xf32>
    %22 = tpu.matmul %19, %21, %cst_15 {dimension_numbers = #tpu.dot_dimension_numbers<[1], [0], [0], [1], [0, 0, 1, 1], [], []>} : vector<512x96xbf16>, vector<96x32xbf16>, vector<512x32xf32> -> vector<512x32xf32>
    %23 = arith.addf %18, %22 : vector<512x32xf32>
    %c0_16 = arith.constant 0 : index
    %c0_17 = arith.constant 0 : index
    %24 = vector.load %arg5[%c0_16, %c0_17] : memref<1x32xf32, #tpu.memory_space<vmem>>, vector<1x32xf32>
    %25 = vector.broadcast %24 : vector<1x32xf32> to vector<512x32xf32>
    %26 = arith.addf %23, %25 : vector<512x32xf32>
    %cst_18 = arith.constant 0.000000e+00 : f32
    %27 = vector.broadcast %cst_18 : f32 to vector<512x32xf32>
    %28 = arith.cmpf ogt, %26, %27 : vector<512x32xf32>
    %cst_19 = arith.constant 2.000000e-01 : f32
    %29 = vector.broadcast %cst_19 : f32 to vector<512x32xf32>
    %30 = arith.mulf %29, %26 : vector<512x32xf32>
    %31 = arith.select %28, %26, %30 : vector<512x32xi1>, vector<512x32xf32>
    %32 = arith.truncf %31 : vector<512x32xf32> to vector<512x32xbf16>
    %c0_20 = arith.constant 0 : index
    %c0_21 = arith.constant 0 : index
    %c0_22 = arith.constant 0 : index
    %33 = vector.load %arg6[%c0_20, %c0_21, %c0_22] : memref<1x512x32xbf16, #tpu.memory_space<vmem>>, vector<1x512x32xbf16>
    %34 = vector.shape_cast %33 : vector<1x512x32xbf16> to vector<512x32xbf16>
    %35 = vector.shape_cast %32 : vector<512x32xbf16> to vector<1x512x32xbf16>
    tpu.vector_store %arg6[%c0_20, %c0_21, %c0_22], %35 {strides = array<i32>} : memref<1x512x32xbf16, #tpu.memory_space<vmem>>, vector<1x512x32xbf16>,
    return
  }
  func.func @transform_0(%arg0: i32, %arg1: i32) -> (i32, i32, i32, i32) {
    %c0_i32 = arith.constant 0 : i32
    %c0_i32_0 = arith.constant 0 : i32
    %c0_i32_1 = arith.constant 0 : i32
    return %arg0, %arg1, %c0_i32, %c0_i32_0 : i32, i32, i32, i32
  }
  func.func @transform_1(%arg0: i32, %arg1: i32) -> (i32, i32, i32, i32) {
    %c1_i32 = arith.constant 1 : i32
    %0 = arith.addi %arg1, %c1_i32 : i32
    %c2_i32 = arith.constant 2 : i32
    %1 = arith.muli %0, %c2_i32 : i32
    %c0_i32 = arith.constant 0 : i32
    %c0_i32_0 = arith.constant 0 : i32
    %c0_i32_1 = arith.constant 0 : i32
    return %arg0, %1, %c0_i32, %c0_i32_0 : i32, i32, i32, i32
  }
  func.func @transform_2(%arg0: i32, %arg1: i32) -> (i32, i32, i32) {
    %c0_i32 = arith.constant 0 : i32
    %c0_i32_0 = arith.constant 0 : i32
    %c0_i32_1 = arith.constant 0 : i32
    %c0_i32_2 = arith.constant 0 : i32
    return %c0_i32, %c0_i32_0, %c0_i32_1 : i32, i32, i32
  }
  func.func @transform_3(%arg0: i32, %arg1: i32) -> (i32, i32) {
    %c0_i32 = arith.constant 0 : i32
    %c0_i32_0 = arith.constant 0 : i32
    %c0_i32_1 = arith.constant 0 : i32
    return %c0_i32, %c0_i32_0 : i32, i32
  }
  func.func @transform_4(%arg0: i32, %arg1: i32) -> (i32, i32, i32) {
    %c0_i32 = arith.constant 0 : i32
    %c0_i32_0 = arith.constant 0 : i32
    return %arg0, %arg1, %c0_i32 : i32, i32, i32
  }
}

</mosaic_0001>

<bundles_post_ra>
// kernel: tpu_custom_call.1
= control target key start
LH: loop header
LB: loop body
LE: loop exit
PB: predicated region body
PF: predicated region fallthrough
CT: control target
= control target key end

     0   :  { %9 = vsyncpa [#allocation3], 0  ;;  %s3965_s0 = inlined_call_operand.hbm [shape: bf16[1,24,32,32], index: 0, kind: input, shape index: {}]   ;;  %s3966_s1 = inlined_call_operand.hbm [shape: bf16[1,24,32,32], index: 1, kind: input, shape index: {}]   ;;  %s3967_s2 = inlined_call_operand.vmem [shape: bf16[3,96,32], index: 2, kind: input, shape index: {}]   ;;  %s3968_s3 = inlined_call_operand.vmem [shape: f32[1,32], index: 3, kind: input, shape index: {}]   ;;  %s3969_s4 = inlined_call_operand.vmem [shape: bf16[1,512,32], index: 4, kind: output, shape index: {}]  }
   0x1   :  { %s15_s17 = sshll.u32 %s3965_s0, 4  ;;  %s16_s17 = int_to_ptr.hbm [resolvable:$true] %s15_s17 }
   0x2   :  { %10 = vsyncpa [#allocation5], 0  ;;  %s2626_s18 = smov [#allocation2]   ;;  %s2157_s22 = scalar_lea.hbm %s3966_s1, 256 }
   0x3   :  { %s17_s19 = sshll.u32 %s2626_s18, 4  ;;  %s2627_s23 = smov 64   ;;  %s18_s19 = int_to_ptr.vmem [resolvable:$true] %s17_s19 }
   0x4   :  { %s2628_s24 = smov 4   ;;  %s34_s25 = sshll.u32 %s2157_s22, 4  ;;  %s35_s25 = int_to_ptr.hbm [resolvable:$true] %s34_s25 }
   0x5   :  { %23 = dma.hbm_to_vmem [thread:$0]  %s16_s17, 4096, %s18_s19, [#allocation3], %s2627_s23, %s2627_s23, %s2628_s24  }
   0x6   :  { %s2629_s26 = smov [#allocation4]  }
   0x7   :  { %s36_s27 = sshll.u32 %s2629_s26, 4  ;;  %s37_s27 = int_to_ptr.vmem [resolvable:$true] %s36_s27 }
   0x8   :  { %42 = dma.hbm_to_vmem [thread:$0]  %s35_s25, 2048, %s37_s27, [#allocation5], %s2627_s23, %s2627_s23, %s2628_s24  }
   0x9   :  { %2622 = dma.done.wait [#allocation3], 4096  }
   0xa   :  { %2623 = vsyncadd [#allocation3], 4294963200 }
   0xb   :  { %2624 = dma.done.wait [#allocation5], 2048  }
   0xc   :  { %2625 = vsyncadd [#allocation5], 4294965248  ;;  %v2666_v0 = vld [vmem:[#allocation2 + $0x20] sm:$0xff]  ;;  %v2668_v1 = vld [vmem:[#allocation2 + $0x28] sm:$0xff]  ;;  %vm680_vm0 = vcmask 1046528   ;;  %s2630_s0 = smov 32  }
   0xd   :  { %v2670_v2 = vld [vmem:[#allocation2] sm:$0xff]  ;;  %v2672_v3 = vld [vmem:[#allocation2 + $0x8] sm:$0xff]  ;;  %v688_v4 = vrot.slane %v2666_v0, 1  ;;  %v690_v5 = vrot.slane %v2668_v1, 1  ;;  %v2677_v7 = vld [vmem:[#allocation2 + $0xd0] sm:$0xff]  ;;  %v348_v9 = vshll.u32 %v2666_v0, 16 }
   0xe   :  { %v681_v6 = vrot.slane %v2670_v2, 1  ;;  %v2679_v8 = vld [vmem:[#allocation2 + $0xd8] sm:$0xff]  ;;  %v682_v10 = vrot.slane %v2672_v3, 1  ;;  %v352_v11 = vshrl.u32 %v2666_v0, 16  ;;  %v356_v14 = vshll.u32 %v2668_v1, 16  ;;  %v2703_v23 = vld [vmem:[#allocation2 + $0x10] sm:$0xff] }
   0xf   :  { %v691_v12 = vsel %vm680_vm0, %v688_v4, %v690_v5  ;;  %v2689_v13 = vrot.slane %v348_v9, 1  ;;  %v732_v16 = vrot.slane %v2677_v7, 1  ;;  %v734_v17 = vrot.slane %v2679_v8, 1  ;;  %v2711_v27 = vld [vmem:[#allocation2 + $0x18] sm:$0xff]  ;;  %v2728_v43 = vld [vmem:[#allocation2 + $0xe0] sm:$0xff]  ;;  %v2732_v48 = vld [vmem:[#allocation2 + $0x30] sm:$0xff] }
  0x10   :  { %762 = vrot.lane.b32.xlu1 %v691_v12, %s2627_s23  ;;  %v683_v15 = vsel %vm680_vm0, %v681_v6, %v682_v10  ;;  %v524_v18 = vshll.u32 %v2677_v7, 16  ;;  %v358_v20 = vrot.slane %v356_v14, 1  ;;  %v317_v21 = vshrl.u32 %v2670_v2, 16  ;;  %v2752_v9 = vld [vmem:[#allocation2 + $0x38] sm:$0xff] }
  0x11   :  { %754 = vrot.lane.b32.xlu0 %v683_v15, %s2627_s23  ;;  %v354_v19 = vor.u32 %v352_v11, %v2689_v13  ;;  %v319_v22 = vshll.u32 %v2670_v2, 16  ;;  %vm315_vm1 = vsmask.f32 7424  ;;  %v324_v24 = vshll.u32 %v2672_v3, 16 }
  0x12   :  { %v735_v26 = vsel %vm680_vm0, %v732_v16, %v734_v17  ;;  %v528_v28 = vshrl.u32 %v2677_v7, 16  ;;  %v332_v30 = vshll.u32 %v2703_v23, 16  ;;  %v2716_v32 = vrot.slane %v524_v18, 1 }
  0x13   :  { %v321_v25 = vrot.slane %v319_v22, 1  ;;  %v326_v29 = vrot.slane %v324_v24, 1  ;;  %v359_v31 = vsel %vm315_vm1, %v354_v19, %v358_v20  ;;  %v532_v33 = vshll.u32 %v2679_v8, 16  ;;  %v2768_v22 = vld [vmem:[#allocation2 + $0xe8] sm:$0xff] }
  0x14   :  { %v334_v35 = vrot.slane %v332_v30, 1  ;;  %v340_v37 = vshll.u32 %v2711_v27, 16  ;;  %v336_v38 = vshrl.u32 %v2703_v23, 16  ;;  %v684_v39 = vrot.slane %v2703_v23, 1 }
  0x15   :  { %v322_v34 = vor.u32 %v321_v25, %v317_v21  ;;  %v686_v40 = vrot.slane %v2711_v27, 1  ;;  %v530_v41 = vor.u32 %v528_v28, %v2716_v32  ;;  %v534_v42 = vrot.slane %v532_v33, 1 }
  0x16   :  { %v338_v44 = vor.u32 %v336_v38, %v334_v35  ;;  %v342_v45 = vrot.slane %v340_v37, 1  ;;  %v536_v47 = vshrl.u32 %v2679_v8, 16  ;;  %v540_v50 = vshll.u32 %v2728_v43, 16 }
  0x17   :  { %v327_v36 = vsel %vm315_vm1, %v322_v34, %v326_v29  ;;  %v687_v46 = vsel %vm680_vm0, %v684_v39, %v686_v40  ;;  %v535_v49 = vsel %vm315_vm1, %v530_v41, %v534_v42  ;;  %v360_v52 = vshrl.u32 %v2668_v1, 16 }
  0x18   :  { %806 = vrot.lane.b32.xlu1 %v735_v26, %s2627_s23  ;;  %608 = vrot.lane.b32.xlu2 %v327_v36, %s2630_s0  ;;  %v343_v51 = vsel %vm315_vm1, %v338_v44, %v342_v45  ;;  %v364_v53 = vshll.u32 %v2732_v48, 16  ;;  %v692_v54 = vrot.slane %v2732_v48, 1  ;;  %v538_v55 = vor.u32 %v536_v47, %v534_v42  ;;  %v2806_v42 = vld [vmem:[#allocation2 + $0xf8] sm:$0xff]  ;;  %v2811_v44 = vld [vmem:[%s3967_s2 + $0x20] sm:$0xff]  ;;  %v2813_v47 = vld [vmem:[#allocation2 + $0x48] sm:$0xff] }
  0x19   :  { %616 = vrot.lane.b32.xlu0 %v359_v31, %s2630_s0  ;;  %v542_v56 = vrot.slane %v540_v50, 1  ;;  %v362_v57 = vor.u32 %v360_v52, %v358_v20  ;;  %v344_v60 = vshrl.u32 %v2711_v27, 16  ;;  %v328_v62 = vshrl.u32 %v2672_v3, 16  ;;  %v2818_v50 = vld [vmem:[%s3967_s2 + $0x88] sm:$0xff]  ;;  %v2541_v52 = vld [vmem:[%s3967_s2 + $0x58] sm:$0xff] }
  0x1a   :  { %v366_v58 = vrot.slane %v364_v53, 1  ;;  %v693_v59 = vsel %vm680_vm0, %v690_v5, %v692_v54  ;;  %v736_v5 = vrot.slane %v2728_v43, 1  ;;  %v368_v14 = vshrl.u32 %v2732_v48, 16  ;;  %1531 = vmatpush.bf16.msra.mxu2 %v2818_v50  ;;  %1100 = vmatpush.bf16.msra.mxu0 %v2541_v52 }
  0x1b   :  { %v543_v61 = vsel %vm315_vm1, %v538_v55, %v542_v56  ;;  %v346_v6 = vor.u32 %v344_v60, %v342_v45  ;;  %v330_v11 = vor.u32 %v328_v62, %v326_v29  ;;  %v372_v15 = vshll.u32 %v2752_v9, 16  ;;  %2548 = vmatpush.bf16.msra.mxu3 %v2541_v52  ;;  %v2848_v62 = vld [vmem:[%s3967_s2 + $0x10] sm:$0xff] }
  0x1c   :  { %v367_v63 = vsel %vm315_vm1, %v362_v57, %v366_v58  ;;  %v737_v19 = vsel %vm680_vm0, %v734_v17, %v736_v5  ;;  %v370_v20 = vor.u32 %v368_v14, %v366_v58  ;;  %v689_v24 = vsel %vm680_vm0, %v686_v40, %v688_v4  ;;  %v2786_v4 = vld [vmem:[%s3967_s2 + $0x28] sm:$0xff] }
  0x1d   :  { %v351_v12 = vsel %vm315_vm1, %v346_v6, %v2689_v13  ;;  %v335_v18 = vsel %vm315_vm1, %v330_v11, %v334_v35  ;;  %v374_v21 = vrot.slane %v372_v15, 1  ;;  %v685_v17 = vsel %vm680_vm0, %v682_v10, %v684_v39  ;;  %v2788_v10 = vld [vmem:[#allocation2 + $0xf0] sm:$0xff]  ;;  %1309 = vmatpush.bf16.msra.mxu1 %v2786_v4  ;;  %v2795_v35 = vld [vmem:[#allocation2 + $0x40] sm:$0xff] }
  0x1e   :  { %v544_v25 = vshrl.u32 %v2728_v43, 16  ;;  %v548_v26 = vshll.u32 %v2768_v22, 16  ;;  %v694_v28 = vrot.slane %v2752_v9, 1  ;;  %v738_v29 = vrot.slane %v2768_v22, 1 }
  0x1f   :  { %v375_v13 = vsel %vm315_vm1, %v370_v20, %v374_v21  ;;  %v552_v36 = vshrl.u32 %v2768_v22, 16  ;;  %v556_v37 = vshll.u32 %v2788_v10, 16  ;;  %v376_v39 = vshrl.u32 %v2752_v9, 16 }
  0x20   :  { %758 = vrot.lane.b32.xlu1 %v687_v46, %s2627_s23  ;;  %612 = vrot.lane.b32.xlu2 %v343_v51, %s2630_s0  ;;  %v546_v30 = vor.u32 %v544_v25, %v542_v56  ;;  %v550_v31 = vrot.slane %v548_v26, 1  ;;  %v695_v33 = vsel %vm680_vm0, %v692_v54, %v694_v28  ;;  %v739_v34 = vsel %vm680_vm0, %v736_v5, %v738_v29  ;;  %v2824_v51 = vld [vmem:[%s3967_s2 + $0x18] sm:$0xff]  ;;  %v2833_v54 = vld [vmem:[%s3967_s2 + $0x80] sm:$0xff]  ;;  %v2859_v5 = vld [vmem:[#allocation2 + $0x50] sm:$0xff] }
  0x21   :  { %660 = vrot.lane.b32.xlu0 %v535_v49, %s2630_s0  ;;  %v380_v40 = vshll.u32 %v2795_v35, 16  ;;  %v696_v41 = vrot.slane %v2795_v35, 1  ;;  %v558_v46 = vrot.slane %v556_v37, 1  ;;  %v378_v49 = vor.u32 %v376_v39, %v374_v21  ;;  %1310 = vmatpush.bf16.msra.mxu1 %v2811_v44  ;;  %v2883_v25 = vld [vmem:[%s3967_s2] sm:$0xff]  ;;  %v2911_v39 = vld [vmem:[#allocation4 + $0x8] sm:$0xff] }
  0x22   :  { %v551_v38 = vsel %vm315_vm1, %v546_v30, %v550_v31  ;;  %v554_v45 = vor.u32 %v552_v36, %v550_v31  ;;  %v560_v56 = vshrl.u32 %v2788_v10, 16  ;;  %v564_v57 = vshll.u32 %v2806_v42, 16  ;;  %1532 = vmatpush.bf16.msra.mxu2 %v2833_v54  ;;  %v2896_v31 = vld [vmem:[%s3967_s2 + $0x70] sm:$0xff] }
  0x23   :  { %v382_v53 = vrot.slane %v380_v40, 1  ;;  %v697_v55 = vsel %vm680_vm0, %v694_v28, %v696_v41  ;;  %v388_v60 = vshll.u32 %v2813_v47, 16  ;;  %v392_v21 = vshrl.u32 %v2813_v47, 16 }
  0x24   :  { %v559_v58 = vsel %vm315_vm1, %v554_v45, %v558_v46  ;;  %v562_v6 = vor.u32 %v560_v56, %v558_v46  ;;  %v566_v11 = vrot.slane %v564_v57, 1  ;;  %v742_v30 = vrot.slane %v2806_v42, 1  ;;  %v2918_v46 = vld [vmem:[#allocation2 + $0x58] sm:$0xff] }
  0x25   :  { %1311 = vmatpush.bf16.msra.mxu1 %v2824_v51  ;;  %v390_v15 = vrot.slane %v388_v60, 1  ;;  %v700_v45 = vrot.slane %v2859_v5, 1  ;;  %v702_v56 = vrot.slane %v2918_v46, 1  ;;  %v404_v60 = vshll.u32 %v2918_v46, 16 }
  0x26   :  { %v567_v20 = vsel %vm315_vm1, %v562_v6, %v566_v11  ;;  %v568_v6 = vshrl.u32 %v2806_v42, 16  ;;  %vm826_vm2 = vcmask 261120   ;;  %vm899_vm3 = vcmask 523264  }
  0x27   :  { %v394_v26 = vor.u32 %v392_v21, %v390_v15  ;;  %v406_v21 = vrot.slane %v404_v60, 1  ;;  %vm1033_vm4 = vcmask 785408   ;;  %vm2086_vm6 = vcmask 257024  }
  0x28   :  { %764 = vrot.lane.b32.xlu1 %v693_v59, %s2627_s23  ;;  %618 = vrot.lane.b32.xlu2 %v367_v63, %s2630_s0  ;;  %v384_v59 = vshrl.u32 %v2795_v35, 16  ;;  %v2855_v63 = vld [vmem:[%s3967_s2 + $0x78] sm:$0xff] }
  0x29   :  { %662 = vrot.lane.b32.xlu0 %v543_v61, %s2630_s0  ;;  %v383_v61 = vsel %vm315_vm1, %v378_v49, %v382_v53  ;;  %1312 = vmatpush.bf16.msra.mxu1 %v2848_v62 }
  0x2a   :  { %v386_v14 = vor.u32 %v384_v59, %v382_v53  ;;  %1533 = vmatpush.bf16.msra.mxu2 %v2855_v63  ;;  %v580_v53 = vshll.u32 %v2911_v39, 16  ;;  %v2926_v59 = vld [vmem:[#allocation2 + $0x60] sm:$0xff] }
  0x2e   :  { %1534 = vmatpush.bf16.msra.mxu2 %v2896_v31 }
  0x30   :  { %614 = vrot.lane.b32.xlu1 %v351_v12, %s2630_s0  ;;  %808 = vrot.lane.b32.xlu2 %v737_v19, %s2627_s23  ;;  %v2540_v12 = vld [vmem:[%s3967_s2 + $0x50] sm:$0xff]  ;;  %v740_v19 = vrot.slane %v2788_v10, 1 }
  0x31   :  { %610 = vrot.lane.b32.xlu0 %v335_v18, %s2630_s0  ;;  %v2868_v18 = vld [vmem:[%s3967_s2 + $0x8] sm:$0xff]  ;;  %1101 = vmatpush.bf16.msra.mxu0 %v2540_v12 }
  0x32   :  { %2549 = vmatpush.bf16.msra.mxu3 %v2540_v12  ;;  %1313 = vmatpush.bf16.msra.mxu1 %v2868_v18  ;;  %v743_v36 = vsel %vm680_vm0, %v740_v19, %v742_v30  ;;  %v703_v12 = vsel %vm680_vm0, %v700_v45, %v702_v56 }
  0x36   :  { %1314 = vmatpush.bf16.msra.mxu1 %v2883_v25 }
  0x38   :  { %620 = vrot.lane.b32.xlu1 %v375_v13, %s2630_s0  ;;  %756 = vrot.lane.b32.xlu2 %v685_v17, %s2627_s23  ;;  %v396_v13 = vshll.u32 %v2859_v5, 16  ;;  %v741_v17 = vsel %vm680_vm0, %v738_v29, %v740_v19  ;;  %v698_v29 = vrot.slane %v2813_v47, 1  ;;  %v570_v19 = vor.u32 %v568_v6, %v566_v11 }
  0x39   :  { %760 = vrot.lane.b32.xlu0 %v689_v24, %s2627_s23  ;;  %v391_v24 = vsel %vm315_vm1, %v386_v14, %v390_v15  ;;  %v2940_v15 = vld [vmem:[%s3967_s2 + $0x68] sm:$0xff] }
  0x3a   :  { %v2887_v28 = vrot.slane %v396_v13, 1  ;;  %v699_v37 = vsel %vm680_vm0, %v696_v41, %v698_v29  ;;  %v408_v13 = vshrl.u32 %v2918_v46, 16  ;;  %1535 = vmatpush.bf16.msra.mxu2 %v2940_v15 }
  0x40   :  { %810 = vrot.lane.b32.xlu1 %v739_v34, %s2627_s23  ;;  %664 = vrot.lane.b32.xlu2 %v551_v38, %s2630_s0  ;;  %v2900_v34 = vld [vmem:[#allocation4] sm:$0xff] }
  0x41   :  { %766 = vrot.lane.b32.xlu0 %v695_v33, %s2627_s23  ;;  %v399_v33 = vsel %vm315_vm1, %v394_v26, %v2887_v28  ;;  %v744_v38 = vrot.slane %v2900_v34, 1  ;;  %v572_v40 = vshll.u32 %v2900_v34, 16  ;;  %v576_v52 = vshrl.u32 %v2900_v34, 16 }
  0x42   :  { %v410_v26 = vor.u32 %v408_v13, %v406_v21 }
  0x43   :  { %v745_v41 = vsel %vm680_vm0, %v742_v30, %v744_v38  ;;  %v574_v49 = vrot.slane %v572_v40, 1  ;;  %v400_v40 = vshrl.u32 %v2859_v5, 16 }
  0x45   :  { %v578_v57 = vor.u32 %v576_v52, %v574_v49  ;;  %v575_v11 = vsel %vm315_vm1, %v570_v19, %v574_v49  ;;  %v2536_v52 = vld [vmem:[%s3967_s2 + $0x30] sm:$0xff] }
  0x48   :  { %768 = vrot.lane.b32.xlu1 %v697_v55, %s2627_s23  ;;  %622 = vrot.lane.b32.xlu2 %v383_v61, %s2630_s0  ;;  %v701_v55 = vsel %vm680_vm0, %v698_v29, %v700_v45  ;;  %v2539_v61 = vld [vmem:[%s3967_s2 + $0x48] sm:$0xff]  ;;  %v2957_v29 = vld [vmem:[#allocation4 + $0x10] sm:$0xff] }
  0x49   :  { %666 = vrot.lane.b32.xlu0 %v559_v58, %s2630_s0  ;;  %v582_v58 = vrot.slane %v580_v53, 1  ;;  %1102 = vmatpush.bf16.msra.mxu0 %v2539_v61  ;;  %v402_v53 = vor.u32 %v400_v40, %v2887_v28  ;;  %v748_v60 = vrot.slane %v2957_v29, 1  ;;  %v416_v28 = vshrl.u32 %v2926_v59, 16 }
  0x4a   :  { %2550 = vmatpush.bf16.msra.mxu3 %v2539_v61  ;;  %v2981_v61 = vld [vmem:[#allocation2 + $0x68] sm:$0xff] }
  0x4b   :  { %v583_v14 = vsel %vm315_vm1, %v578_v57, %v582_v58  ;;  %v407_v57 = vsel %vm315_vm1, %v402_v53, %v406_v21  ;;  %v420_v6 = vshll.u32 %v2981_v61, 16  ;;  %v704_v21 = vrot.slane %v2926_v59, 1 }
  0x4c   :  { %v706_v13 = vrot.slane %v2981_v61, 1 }
  0x4d   :  { %v2989_v19 = vrot.slane %v420_v6, 1 }
  0x50   :  { %668 = vrot.lane.b32.xlu1 %v567_v20, %s2630_s0  ;;  %812 = vrot.lane.b32.xlu2 %v741_v17, %s2627_s23  ;;  %v2538_v20 = vld [vmem:[%s3967_s2 + $0x40] sm:$0xff] }
  0x51   :  { %624 = vrot.lane.b32.xlu0 %v391_v24, %s2630_s0  ;;  %v412_v24 = vshll.u32 %v2926_v59, 16  ;;  %v2951_v17 = vld [vmem:[%s3967_s2 + $0x60] sm:$0xff]  ;;  %1103 = vmatpush.bf16.msra.mxu0 %v2538_v20 }
  0x52   :  { %2551 = vmatpush.bf16.msra.mxu3 %v2538_v20  ;;  %1536 = vmatpush.bf16.msra.mxu2 %v2951_v17 }
  0x53   :  { %v414_v30 = vrot.slane %v412_v24, 1 }
  0x55   :  { %v415_v45 = vsel %vm315_vm1, %v410_v26, %v414_v30 }
  0x58   :  { %626 = vrot.lane.b32.xlu1 %v399_v33, %s2630_s0  ;;  %770 = vrot.lane.b32.xlu2 %v699_v37, %s2627_s23  ;;  %v2537_v33 = vld [vmem:[%s3967_s2 + $0x38] sm:$0xff]  ;;  %v588_v37 = vshll.u32 %v2957_v29, 16 }
  0x59   :  { %814 = vrot.lane.b32.xlu0 %v743_v36, %s2627_s23  ;;  %v584_v36 = vshrl.u32 %v2911_v39, 16  ;;  %1104 = vmatpush.bf16.msra.mxu0 %v2537_v33 }
  0x5a   :  { %2552 = vmatpush.bf16.msra.mxu3 %v2537_v33  ;;  %v2967_v49 = vrot.slane %v588_v37, 1 }
  0x5d   :  { %1105 = vmatpush.bf16.msra.mxu0 %v2536_v52 }
  0x5e   :  { %2553 = vmatpush.bf16.msra.mxu3 %v2536_v52 }
  0x60   :  { %816 = vrot.lane.b32.xlu1 %v745_v41, %s2627_s23  ;;  %670 = vrot.lane.b32.xlu2 %v575_v11, %s2630_s0  ;;  %v586_v41 = vor.u32 %v584_v36, %v582_v58  ;;  %v746_v58 = vrot.slane %v2911_v39, 1  ;;  %v3003_v11 = vld [vmem:[#allocation2 + $0xc0] sm:$0xff] }
  0x61   :  { %772 = vrot.lane.b32.xlu0 %v701_v55, %s2627_s23  ;;  %v728_v26 = vrot.slane %v3003_v11, 1 }
  0x62   :  { %v591_v55 = vsel %vm315_vm1, %v586_v41, %v2967_v49  ;;  %2554 = vmatpush.bf16.msrb.mxu3 %v2786_v4  ;;  %v747_v20 = vsel %vm680_vm0, %v744_v38, %v746_v58  ;;  %v3005_v38 = vld [vmem:[#allocation2 + $0xc8] sm:$0xff] }
  0x63   :  { %v516_v52 = vshll.u32 %v3005_v38, 16 }
  0x66   :  { %2555 = vmatpush.bf16.msrb.mxu3 %v2811_v44  ;;  %v707_v44 = vsel %vm680_vm0, %v704_v21, %v706_v13 }
  0x68   :  { %774 = vrot.lane.b32.xlu1 %v703_v12, %s2627_s23  ;;  %628 = vrot.lane.b32.xlu2 %v407_v57, %s2630_s0  ;;  %v749_v12 = vsel %vm680_vm0, %v746_v58, %v748_v60 }
  0x69   :  { %672 = vrot.lane.b32.xlu0 %v583_v14, %s2630_s0  ;;  %v418_v14 = vor.u32 %v416_v28, %v414_v30  ;;  %v730_v30 = vrot.slane %v3005_v38, 1 }
  0x6a   :  { %2556 = vmatpush.bf16.msrb.mxu3 %v2824_v51 }
  0x6b   :  { %v423_v4 = vsel %vm315_vm1, %v418_v14, %v2989_v19  ;;  %v731_v51 = vsel %vm680_vm0, %v728_v26, %v730_v30 }
  0x6e   :  { %2557 = vmatpush.bf16.msrb.mxu3 %v2848_v62 }
  0x70   :  { %674 = vrot.lane.b32.xlu1 %v591_v55, %s2630_s0  ;;  %818 = vrot.lane.b32.xlu2 %v747_v20, %s2627_s23  ;;  %v508_v20 = vshll.u32 %v3003_v11, 16 }
  0x71   :  { %630 = vrot.lane.b32.xlu0 %v415_v45, %s2630_s0  ;;  %v3028_v45 = vld [vmem:[#allocation2 + $0x70] sm:$0xff] }
  0x72   :  { %v609_v24 = vpop.permute.xlu2 %608  ;;  %2558 = vmatpush.bf16.msrb.mxu3 %v2868_v18  ;;  %v708_v55 = vrot.slane %v3028_v45, 1  ;;  %v520_v18 = vshrl.u32 %v3005_v38, 16 }
  0x73   :  { %v828_v33 = vsel %vm826_vm2, %v2670_v2, %v609_v24  ;;  %v705_v2 = vsel %vm680_vm0, %v702_v56, %v704_v21  ;;  %v518_v56 = vrot.slane %v516_v52, 1  ;;  %v3055_v24 = vrot.slane %v508_v20, 1 }
  0x74   :  { %v709_v28 = vsel %vm680_vm0, %v706_v13, %v708_v55 }
  0x75   :  { %v522_v6 = vor.u32 %v520_v18, %v518_v56  ;;  %v424_v18 = vshrl.u32 %v2981_v61, 16 }
  0x76   :  { %2559 = vmatpush.bf16.msrb.mxu3 %v2883_v25 }
  0x78   :  { %632 = vrot.lane.b32.xlu1 %v423_v4, %s2630_s0  ;;  %776 = vrot.lane.b32.xlu2 %v705_v2, %s2627_s23 }
  0x79   :  { %820 = vrot.lane.b32.xlu0 %v749_v12, %s2627_s23 }
  0x7a   :  { %v613_v62 = vpop.permute.xlu2 %612 }
  0x7b   :  { %v832_v12 = vsel %vm826_vm2, %v2703_v23, %v613_v62  ;;  %v512_v23 = vshrl.u32 %v3003_v11, 16 }
  0x80   :  { %802 = vrot.lane.b32.xlu1 %v731_v51, %s2627_s23 }
  0x81   :  { %778 = vrot.lane.b32.xlu0 %v707_v44, %s2627_s23  ;;  %v514_v44 = vor.u32 %v512_v23, %v3055_v24 }
  0x82   :  { %v763_v36 = vpop.permute.xlu1 %762  ;;  %v619_v25 = vpop.permute.xlu2 %618 }
  0x83   :  { %v755_v37 = vpop.permute.xlu0 %754 }
  0x84   :  { %v901_v40 = vsel %vm899_vm3, %v828_v33, %v755_v37  ;;  %v838_v33 = vsel %vm826_vm2, %v2668_v1, %v619_v25  ;;  %v3069_v37 = vld [vmem:[#allocation2 + $0x78] sm:$0xff] }
  0x85   :  { %2394 = vmatmul.msk.bf16.vlgmr.msra.gmra.mxu1 %vm1033_vm4, %v901_v40  ;;  %v428_v40 = vshll.u32 %v3028_v45, 16 }
  0x87   :  { %v430_v52 = vrot.slane %v428_v40, 1 }
  0x88   :  { %780 = vrot.lane.b32.xlu1 %v709_v28, %s2627_s23 }
  0x8a   :  { %v807_v41 = vpop.permute.xlu1 %806  ;;  %v809_v51 = vpop.permute.xlu2 %808 }
  0x8b   :  { %v617_v53 = vpop.permute.xlu0 %616 }
  0x8c   :  { %v836_v57 = vsel %vm826_vm2, %v2666_v0, %v617_v53  ;;  %v527_v0 = vsel %vm315_vm1, %v522_v6, %v2716_v32  ;;  %v436_v53 = vshll.u32 %v3069_v37, 16 }
  0x8d   :  { %v3036_v58 = vsel %vm899_vm3, %v836_v57, %v763_v36  ;;  %658 = vrot.lane.b32.xlu0 %v527_v0, %s2630_s0  ;;  %v519_v36 = vsel %vm315_vm1, %v514_v44, %v518_v56  ;;  %v710_v56 = vrot.slane %v3069_v37, 1  ;;  %v3116_v44 = vld [vmem:[#allocation2 + $0x80] sm:$0xff] }
  0x8e   :  { %2462 = vmatmul.msk.bf16.vlgmr.msra.gmra.mxu2 %vm1033_vm4, %v3036_v58  ;;  %656 = vrot.lane.b32.xlu2 %v519_v36, %s2630_s0  ;;  %v3078_v57 = vrot.slane %v436_v53, 1  ;;  %v3138_v36 = vld [vmem:[#allocation2 + $0x88] sm:$0xff] }
  0x8f   :  { %v711_v25 = vsel %vm680_vm0, %v708_v55, %v710_v56 }
  0x90   :  { %782 = vrot.lane.b32.xlu1 %v711_v25, %s2627_s23 }
  0x92   :  { %v759_v14 = vpop.permute.xlu1 %758  ;;  %v757_v0 = vpop.permute.xlu2 %756 }
  0x93   :  { %v661_v4 = vpop.permute.xlu0 %660  ;;  %v3049_v21 = vsel %vm899_vm3, %v832_v12, %v759_v14 }
  0x94   :  { %v880_v13 = vsel %vm826_vm2, %v2677_v7, %v661_v4  ;;  %2338 = vmatmul.msk.bf16.vlgmr.msra.gmra.mxu0 %vm1033_vm4, %v3049_v21  ;;  %v712_v7 = vrot.slane %v3116_v44, 1 }
  0x95   :  { %v3059_v32 = vsel %vm899_vm3, %v880_v13, %v807_v41 }
  0x96   :  { %2362 = vmatmul.msk.bf16.vlgmr.msra.gmra.mxu3 %vm1033_vm4, %v3059_v32 }
  0x97   :  { %2560 = vmatpush.bf16.msra.mxu3 %v2818_v50  ;;  %v432_v50 = vshrl.u32 %v3028_v45, 16 }
  0x99   :  { %v434_v1 = vor.u32 %v432_v50, %v430_v52 }
  0x9a   :  { %v765_v62 = vpop.permute.xlu1 %764  ;;  %v665_v23 = vpop.permute.xlu2 %664 }
  0x9b   :  { %v663_v2 = vpop.permute.xlu0 %662  ;;  %v3073_v41 = vsel %vm899_vm3, %v838_v33, %v765_v62  ;;  %2561 = vmatpush.bf16.msra.mxu3 %v2833_v54  ;;  %v439_v28 = vsel %vm315_vm1, %v434_v1, %v3078_v57  ;;  %v426_v54 = vor.u32 %v424_v18, %v2989_v19  ;;  %v448_v62 = vshrl.u32 %v3116_v44, 16 }
  0x9c   :  { %636 = vrot.lane.b32.xlu0 %v439_v28, %s2630_s0  ;;  %v882_v6 = vsel %vm826_vm2, %v2679_v8, %v663_v2  ;;  %v733_v8 = vsel %vm680_vm0, %v730_v30, %v732_v16  ;;  %v884_v16 = vsel %vm826_vm2, %v2728_v43, %v665_v23  ;;  %v452_v2 = vshll.u32 %v3138_v36, 16 }
  0x9d   :  { %v431_v14 = vsel %vm315_vm1, %v426_v54, %v430_v52  ;;  %v3099_v55 = vsel %vm899_vm3, %v882_v6, %v809_v51  ;;  %v440_v54 = vshrl.u32 %v3069_v37, 16 }
  0x9e   :  { %2463 = vmatmul.msk.bf16.gmra.mxu2 %vm1033_vm4, %v3073_v41  ;;  %634 = vrot.lane.b32.xlu2 %v431_v14, %s2630_s0  ;;  %v454_v53 = vrot.slane %v452_v2, 1  ;;  %v456_v14 = vshrl.u32 %v3138_v36, 16 }
  0x9f   :  { %2562 = vmatpush.bf16.msra.mxu3 %v2855_v63 }
  0xa2   :  { %v615_v12 = vpop.permute.xlu1 %614  ;;  %v623_v43 = vpop.permute.xlu2 %622 }
  0xa3   :  { %v611_v20 = vpop.permute.xlu0 %610  ;;  %2563 = vmatpush.bf16.msra.mxu3 %v2896_v31  ;;  %v842_v18 = vsel %vm826_vm2, %v2752_v9, %v623_v43  ;;  %v3196_v43 = vld [vmem:[#allocation2 + $0x98] sm:$0xff] }
  0xa4   :  { %v830_v63 = vsel %vm826_vm2, %v2672_v3, %v611_v20  ;;  %v834_v3 = vsel %vm826_vm2, %v2711_v27, %v615_v12 }
  0xa5   :  { %v903_v19 = vsel %vm899_vm3, %v830_v63, %v757_v0  ;;  %v3166_v0 = vld [vmem:[#allocation2 + $0x90] sm:$0xff] }
  0xa6   :  { %2363 = vmatmul.msk.bf16.gmra.mxu3 %vm1033_vm4, %v3099_v55  ;;  %2395 = vmatmul.msk.bf16.gmra.mxu1 %vm1033_vm4, %v903_v19  ;;  %v460_v20 = vshll.u32 %v3166_v0, 16 }
  0xa7   :  { %2564 = vmatpush.bf16.msra.mxu3 %v2940_v15  ;;  %804 = vrot.lane.b32.xlu2 %v733_v8, %s2627_s23  ;;  %v713_v15 = vsel %vm680_vm0, %v710_v56, %v712_v7  ;;  %v714_v8 = vrot.slane %v3138_v36, 1 }
  0xa8   :  { %784 = vrot.lane.b32.xlu0 %v713_v15, %s2627_s23  ;;  %v462_v19 = vrot.slane %v460_v20, 1 }
  0xaa   :  { %v621_v31 = vpop.permute.xlu1 %620  ;;  %v813_v56 = vpop.permute.xlu2 %812 }
  0xab   :  { %v761_v4 = vpop.permute.xlu0 %760  ;;  %2565 = vmatpush.bf16.msra.mxu3 %v2951_v17  ;;  %v840_v17 = vsel %vm826_vm2, %v2732_v48, %v621_v31  ;;  %v444_v48 = vshll.u32 %v3116_v44, 16  ;;  %v716_v31 = vrot.slane %v3166_v0, 1 }
  0xac   :  { %v907_v13 = vsel %vm899_vm3, %v834_v3, %v761_v4 }
  0xad   :  { %2339 = vmatmul.msk.bf16.gmra.mxu0 %vm1033_vm4, %v907_v13  ;;  %v446_v40 = vrot.slane %v444_v48, 1  ;;  %v717_v23 = vsel %vm680_vm0, %v714_v8, %v716_v31  ;;  %v718_v48 = vrot.slane %v3196_v43, 1 }
  0xaf   :  { %v450_v50 = vor.u32 %v448_v62, %v446_v40  ;;  %v719_v2 = vsel %vm680_vm0, %v716_v31, %v718_v48  ;;  %v3247_v31 = vld [vmem:[#allocation2 + $0xa8] sm:$0xff] }
  0xb1   :  { %v455_v1 = vsel %vm315_vm1, %v450_v50, %v454_v53 }
  0xb2   :  { %v811_v27 = vpop.permute.xlu1 %810  ;;  %640 = vrot.lane.b32.xlu1 %v455_v1, %s2630_s0  ;;  %v771_v15 = vpop.permute.xlu2 %770 }
  0xb3   :  { %v767_v30 = vpop.permute.xlu0 %766  ;;  %v3127_v33 = vsel %vm899_vm3, %v884_v16, %v811_v27 }
  0xb4   :  { %v3130_v51 = vsel %vm899_vm3, %v840_v17, %v767_v30 }
  0xb5   :  { %2464 = vmatmul.msk.bf16.gmra.mxu2 %vm1033_vm4, %v3130_v51 }
  0xb6   :  { %2364 = vmatmul.msk.bf16.gmra.mxu3 %vm1033_vm4, %v3127_v33  ;;  %2396 = vmatmul.msk.bf16.gmra.mxu1 %vm1033_vm4, %v3049_v21 }
  0xba   :  { %v769_v28 = vpop.permute.xlu1 %768  ;;  %788 = vrot.lane.b32.xlu1 %v717_v23, %s2627_s23  ;;  %v671_v30 = vpop.permute.xlu2 %670 }
  0xbb   :  { %v667_v52 = vpop.permute.xlu0 %666  ;;  %v3156_v6 = vsel %vm899_vm3, %v842_v18, %v769_v28 }
  0xbc   :  { %v886_v21 = vsel %vm826_vm2, %v2768_v22, %v667_v52  ;;  %v442_v22 = vor.u32 %v440_v54, %v3078_v57  ;;  %v458_v57 = vor.u32 %v456_v14, %v454_v53  ;;  %v468_v53 = vshll.u32 %v3196_v43, 16 }
  0xbd   :  { %2340 = vmatmul.msk.bf16.gmra.mxu0 %vm1033_vm4, %v3036_v58  ;;  %v3152_v25 = vsel %vm899_vm3, %v886_v21, %v813_v56  ;;  %v472_v21 = vshrl.u32 %v3196_v43, 16 }
  0xbe   :  { %v447_v12 = vsel %vm315_vm1, %v442_v22, %v446_v40  ;;  %v463_v3 = vsel %vm315_vm1, %v458_v57, %v462_v19  ;;  %v890_v40 = vsel %vm826_vm2, %v2806_v42, %v671_v30  ;;  %v470_v1 = vrot.slane %v468_v53, 1 }
  0xbf   :  { %638 = vrot.lane.b32.xlu2 %v447_v12, %s2630_s0  ;;  %642 = vrot.lane.b32.xlu0 %v463_v3, %s2630_s0 }
  0xc0   :  { %v474_v28 = vor.u32 %v472_v21, %v470_v1 }
  0xc2   :  { %v669_v63 = vpop.permute.xlu1 %668  ;;  %v629_v42 = vpop.permute.xlu2 %628 }
  0xc3   :  { %v625_v9 = vpop.permute.xlu0 %624  ;;  %v888_v4 = vsel %vm826_vm2, %v2788_v10, %v669_v63  ;;  %v848_v12 = vsel %vm826_vm2, %v2859_v5, %v629_v42  ;;  %v464_v63 = vshrl.u32 %v3166_v0, 16  ;;  %v3280_v42 = vld [vmem:[#allocation2 + $0xb0] sm:$0xff] }
  0xc4   :  { %v844_v16 = vsel %vm826_vm2, %v2795_v35, %v625_v9  ;;  %v715_v35 = vsel %vm680_vm0, %v712_v7, %v714_v8  ;;  %v724_v53 = vrot.slane %v3280_v42, 1 }
  0xc5   :  { %2465 = vmatmul.msk.bf16.gmra.mxu2 %vm1033_vm4, %v3156_v6  ;;  %v3186_v17 = vsel %vm899_vm3, %v844_v16, %v771_v15  ;;  %v466_v8 = vor.u32 %v464_v63, %v462_v19  ;;  %v722_v16 = vrot.slane %v3247_v31, 1 }
  0xc6   :  { %2365 = vmatmul.msk.bf16.gmra.mxu3 %vm1033_vm4, %v3152_v25  ;;  %2397 = vmatmul.msk.bf16.gmra.mxu1 %vm1033_vm4, %v907_v13 }
  0xc7   :  { %786 = vrot.lane.b32.xlu2 %v715_v35, %s2627_s23  ;;  %790 = vrot.lane.b32.xlu0 %v719_v2, %s2627_s23 }
  0xca   :  { %v627_v10 = vpop.permute.xlu1 %626  ;;  %v819_v9 = vpop.permute.xlu2 %818 }
  0xcb   :  { %v815_v13 = vpop.permute.xlu0 %814 }
  0xcc   :  { %v3183_v27 = vsel %vm899_vm3, %v888_v4, %v815_v13  ;;  %v484_v4 = vshll.u32 %v3247_v31, 16 }
  0xcd   :  { %2341 = vmatmul.msk.bf16.gmra.mxu0 %vm1033_vm4, %v3073_v41 }
  0xce   :  { %v3253_v23 = vrot.slane %v484_v4, 1 }
  0xd2   :  { %v817_v62 = vpop.permute.xlu1 %816 }
  0xd3   :  { %v773_v7 = vpop.permute.xlu0 %772  ;;  %v3208_v52 = vsel %vm899_vm3, %v890_v40, %v817_v62  ;;  %v777_v62 = vpop.permute.xlu2 %776 }
  0xd5   :  { %2466 = vmatmul.msk.bf16.gmra.mxu2 %vm1033_vm4, %v3186_v17 }
  0xd6   :  { %2366 = vmatmul.msk.bf16.gmra.mxu3 %vm1033_vm4, %v3183_v27  ;;  %2398 = vmatmul.msk.bf16.gmra.mxu1 %vm1033_vm4, %v3036_v58  ;;  %v846_v58 = vsel %vm826_vm2, %v2813_v47, %v627_v10  ;;  %v3219_v47 = vld [vmem:[#allocation2 + $0xa0] sm:$0xff] }
  0xd7   :  { %v3211_v50 = vsel %vm899_vm3, %v846_v58, %v773_v7  ;;  %v476_v56 = vshll.u32 %v3219_v47, 16  ;;  %v480_v3 = vshrl.u32 %v3219_v47, 16 }
  0xd9   :  { %v478_v54 = vrot.slane %v476_v56, 1 }
  0xda   :  { %v775_v14 = vpop.permute.xlu1 %774 }
  0xdb   :  { %v673_v18 = vpop.permute.xlu0 %672  ;;  %v479_v22 = vsel %vm315_vm1, %v474_v28, %v478_v54  ;;  %v3237_v57 = vsel %vm899_vm3, %v848_v12, %v775_v14  ;;  %v482_v19 = vor.u32 %v480_v3, %v478_v54  ;;  %v492_v3 = vshll.u32 %v3280_v42, 16 }
  0xdc   :  { %646 = vrot.lane.b32.xlu1 %v479_v22, %s2630_s0 }
  0xdd   :  { %2342 = vmatmul.msk.bf16.gmra.mxu0 %vm1033_vm4, %v3130_v51  ;;  %v487_v15 = vsel %vm315_vm1, %v482_v19, %v3253_v23 }
  0xde   :  { %648 = vrot.lane.b32.xlu0 %v487_v15, %s2630_s0  ;;  %v494_v15 = vrot.slane %v492_v3, 1 }
  0xe2   :  { %v675_v13 = vpop.permute.xlu1 %674 }
  0xe3   :  { %v631_v5 = vpop.permute.xlu0 %630  ;;  %v894_v10 = vsel %vm826_vm2, %v2911_v39, %v675_v13 }
  0xe4   :  { %v850_v40 = vsel %vm826_vm2, %v2918_v46, %v631_v5 }
  0xe5   :  { %2467 = vmatmul.msk.bf16.gmra.mxu2 %vm1033_vm4, %v3211_v50  ;;  %v3270_v58 = vsel %vm899_vm3, %v850_v40, %v777_v62 }
  0xe6   :  { %2367 = vmatmul.msk.bf16.gmra.mxu3 %vm1033_vm4, %v3208_v52  ;;  %2399 = vmatmul.msk.bf16.gmra.mxu1 %vm1033_vm4, %v3073_v41  ;;  %v892_v41 = vsel %vm826_vm2, %v2900_v34, %v673_v18  ;;  %v471_v34 = vsel %vm315_vm1, %v466_v8, %v470_v1 }
  0xe7   :  { %v3233_v20 = vsel %vm899_vm3, %v892_v41, %v819_v9  ;;  %644 = vrot.lane.b32.xlu2 %v471_v34, %s2630_s0  ;;  %v3296_v41 = vld [vmem:[%s3968_s3] ss:$0 sm:$0xff]  ;;  %v3313_v34 = vld [vmem:[#allocation2 + $0xb8] sm:$0xff] }
  0xe8   :  { %v657_v7 = vpop.permute.xlu2 %656 }
  0xe9   :  { %v876_v21 = vsel %vm826_vm2, %v3003_v11, %v657_v7 }
  0xea   :  { %v633_v39 = vpop.permute.xlu1 %632 }
  0xeb   :  { %v821_v35 = vpop.permute.xlu0 %820 }
  0xec   :  { %v3267_v2 = vsel %vm899_vm3, %v894_v10, %v821_v35  ;;  %v500_v35 = vshll.u32 %v3313_v34, 16 }
  0xed   :  { %2343 = vmatmul.msk.bf16.gmra.mxu0 %vm1033_vm4, %v3156_v6 }
  0xf2   :  { %v803_v56 = vpop.permute.xlu1 %802 }
  0xf3   :  { %v779_v18 = vpop.permute.xlu0 %778  ;;  %v3299_v9 = vsel %vm899_vm3, %v876_v21, %v803_v56 }
  0xf5   :  { %2468 = vmatmul.msk.bf16.gmra.mxu2 %vm1033_vm4, %v3237_v57 }
  0xf6   :  { %2368 = vmatmul.msk.bf16.gmra.mxu3 %vm1033_vm4, %v3233_v20  ;;  %2400 = vmatmul.msk.bf16.gmra.mxu1 %vm1033_vm4, %v3130_v51  ;;  %v720_v51 = vrot.slane %v3219_v47, 1 }
  0xf8   :  { %v723_v30 = vsel %vm680_vm0, %v720_v51, %v722_v16  ;;  %v721_v46 = vsel %vm680_vm0, %v718_v48, %v720_v51  ;;  %v852_v48 = vsel %vm826_vm2, %v2926_v59, %v633_v39  ;;  %v635_v63 = vpop.permute.xlu2 %634  ;;  %v502_v39 = vrot.slane %v500_v35, 1 }
  0xf9   :  { %794 = vrot.lane.b32.xlu1 %v723_v30, %s2627_s23  ;;  %792 = vrot.lane.b32.xlu2 %v721_v46, %s2627_s23  ;;  %v3302_v14 = vsel %vm899_vm3, %v852_v48, %v779_v18 }
  0xfa   :  { %v781_v48 = vpop.permute.xlu1 %780 }
  0xfd   :  { %2344 = vmatmul.msk.bf16.gmra.mxu0 %vm1033_vm4, %v3186_v17 }
  0xff   :  { %v659_v40 = vpop.permute.xlu0 %658 }
 0x100   :  { %v878_v7 = vsel %vm826_vm2, %v3005_v38, %v659_v40  ;;  %v488_v38 = vshrl.u32 %v3247_v31, 16 }
 0x102   :  { %v1316_v1 = vpop.f32.mrf.mxu1  ;;  %v783_v35 = vpop.permute.xlu1 %782 }
 0x105   :  { %2469 = vmatmul.msk.bf16.gmra.mxu2 %vm1033_vm4, %v3270_v58 }
 0x106   :  { %2369 = vmatmul.msk.bf16.gmra.mxu3 %vm1033_vm4, %v3267_v2  ;;  %2401 = vmatmul.msk.bf16.gmra.mxu1 %vm1033_vm4, %v3156_v6  ;;  %v725_v6 = vsel %vm680_vm0, %v722_v16, %v724_v53 }
 0x107   :  { %796 = vrot.lane.b32.xlu0 %v725_v6, %s2627_s23  ;;  %v854_v6 = vsel %vm826_vm2, %v2981_v61, %v635_v63  ;;  %v490_v61 = vor.u32 %v488_v38, %v3253_v23 }
 0x10a   :  { %v1318_v4 = vpop.f32.mrf.mxu1 }
 0x10d   :  { %2345 = vmatmul.msk.bf16.gmra.mxu0 %vm1033_vm4, %v3211_v50 }
 0x111   :  { %v1107_v28 = vpop.f32.mrf.mxu0  ;;  %v1538_v54 = vpop.f32.mrf.mxu2 }
 0x112   :  { %v1317_v22 = vadd.f32 %v1316_v1, %v1107_v28  ;;  %v805_v1 = vpop.permute.xlu2 %804 }
 0x114   :  { %v1698_v12 = vadd.f32 %v1538_v54, %v1317_v22  ;;  %v3334_v22 = vsel %vm899_vm3, %v878_v7, %v805_v1 }
 0x115   :  { %2470 = vmatmul.msk.bf16.gmra.mxu2 %vm1033_vm4, %v3302_v14 }
 0x116   :  { %v1766_v59 = vadd.f32 %v3296_v41, %v1698_v12  ;;  %2402 = vmatmul.msk.bf16.gmra.mxu1 %vm1033_vm4, %v3186_v17  ;;  %2418 = vmatmul.msk.bf16.vlgmr.msrb.gmra.mxu3 %vm1033_vm4, %v3299_v9  ;;  %v496_v17 = vshrl.u32 %v3280_v42, 16 }
 0x118   :  { %vm1830_vm5 = vcmp.gt.f32.partialorder %v1766_v59, 0.0  ;;  %v1894_v8 = vmul.f32 0.2, %v1766_v59  ;;  %v498_v62 = vor.u32 %v496_v17, %v494_v15  ;;  %v726_v17 = vrot.slane %v3313_v34, 1 }
 0x119   :  { %v3311_v5 = vpop.f32.mrf.mxu3  ;;  %v1109_v19 = vpop.f32.mrf.mxu0 }
 0x11a   :  { %v1958_v13 = vsel %vm1830_vm5, %v1766_v59, %v1894_v8  ;;  %v1319_v16 = vadd.f32 %v1318_v4, %v1109_v19  ;;  %v1540_v10 = vpop.f32.mrf.mxu2  ;;  %v503_v21 = vsel %vm315_vm1, %v498_v62, %v502_v39  ;;  %v3338_v59 = vsel %vm899_vm3, %v854_v6, %v781_v48 }
 0x11b   :  { %v2022_v51 = vpack.c.bf16 %v1958_v13, %v1958_v13  ;;  %652 = vrot.lane.b32.xlu1 %v503_v21, %s2630_s0  ;;  %v495_v8 = vsel %vm315_vm1, %v490_v61, %v494_v15  ;;  %v504_v19 = vshrl.u32 %v3313_v34, 16  ;;  %v729_v62 = vsel %vm680_vm0, %v726_v17, %v728_v26 }
 0x11c   :  { %v1699_v30 = vadd.f32 %v1540_v10, %v1319_v16  ;;  %650 = vrot.lane.b32.xlu2 %v495_v8, %s2630_s0  ;;  %v727_v48 = vsel %vm680_vm0, %v724_v53, %v726_v17  ;;  %v639_v8 = vpop.permute.xlu2 %638 }
 0x11d   :  { %2087 = vst.msk [vmem:[%s3969_s4] sm:$0xf] %vm2086_vm6, %v2022_v51  ;;  %2346 = vmatmul.msk.bf16.gmra.mxu0 %vm1033_vm4, %v3237_v57  ;;  %v637_v51 = vpop.permute.xlu0 %636 }
 0x11e   :  { %v1767_v46 = vadd.f32 %v3296_v41, %v1699_v30  ;;  %v856_v15 = vsel %vm826_vm2, %v3028_v45, %v637_v51 }
 0x11f   :  { %v3372_v45 = vsel %vm899_vm3, %v856_v15, %v783_v35 }
 0x120   :  { %vm1831_vm7 = vcmp.gt.f32.partialorder %v1767_v46, 0.0  ;;  %v1895_v56 = vmul.f32 0.2, %v1767_v46 }
 0x121   :  { %v3330_v18 = vpop.f32.mrf.mxu3 }
 0x122   :  { %v1959_v28 = vsel %vm1831_vm7, %v1767_v46, %v1895_v56  ;;  %v1543_v63 = vpop.f32.mrf.mxu2 }
 0x123   :  { %v1321_v54 = vpop.f32.mrf.mxu1  ;;  %v2023_v12 = vpack.c.bf16 %v1959_v28, %v1959_v28  ;;  %800 = vrot.lane.b32.xlu1 %v729_v62, %s2627_s23 }
 0x124   :  { %798 = vrot.lane.b32.xlu2 %v727_v48, %s2627_s23 }
 0x125   :  { %2471 = vmatmul.msk.bf16.gmra.mxu2 %vm1033_vm4, %v3338_v59  ;;  %2088 = vst.msk [vmem:[%s3969_s4 + $0x4] sm:$0xf] %vm2086_vm6, %v2023_v12 }
 0x126   :  { %2403 = vmatmul.msk.bf16.gmra.mxu1 %vm1033_vm4, %v3211_v50  ;;  %2419 = vmatmul.msk.bf16.gmra.mxu3 %vm1033_vm4, %v3334_v22  ;;  %v506_v50 = vor.u32 %v504_v19, %v502_v39 }
 0x128   :  { %v511_v30 = vsel %vm315_vm1, %v506_v50, %v3055_v24 }
 0x129   :  { %v3353_v3 = vpop.f32.mrf.mxu3  ;;  %654 = vrot.lane.b32.xlu0 %v511_v30, %s2630_s0 }
 0x12a   :  { %v1112_v4 = vpop.f32.mrf.mxu0  ;;  %v1545_v40 = vpop.f32.mrf.mxu2 }
 0x12b   :  { %v1322_v23 = vadd.f32 %v1321_v54, %v1112_v4  ;;  %v1323_v13 = vpop.f32.mrf.mxu1 }
 0x12d   :  { %v1700_v16 = vadd.f32 %v1543_v63, %v1322_v23  ;;  %2347 = vmatmul.msk.bf16.gmra.mxu0 %vm1033_vm4, %v3270_v58  ;;  %v858_v23 = vsel %vm826_vm2, %v3069_v37, %v639_v8 }
 0x12f   :  { %v1768_v10 = vadd.f32 %v3296_v41, %v1700_v16 }
 0x131   :  { %vm1832_vm8 = vcmp.gt.f32.partialorder %v1768_v10, 0.0  ;;  %v1896_v39 = vmul.f32 0.2, %v1768_v10  ;;  %v3368_v46 = vpop.f32.mrf.mxu3 }
 0x132   :  { %v1114_v7 = vpop.f32.mrf.mxu0 }
 0x133   :  { %v1960_v1 = vsel %vm1832_vm8, %v1768_v10, %v1896_v39  ;;  %v1324_v21 = vadd.f32 %v1323_v13, %v1114_v7  ;;  %v1326_v24 = vpop.f32.mrf.mxu1  ;;  %v785_v13 = vpop.permute.xlu0 %784 }
 0x134   :  { %v2024_v56 = vpack.c.bf16 %v1960_v1, %v1960_v1  ;;  %v3403_v17 = vsel %vm899_vm3, %v858_v23, %v785_v13 }
 0x135   :  { %v1701_v6 = vadd.f32 %v1545_v40, %v1324_v21  ;;  %2472 = vmatmul.msk.bf16.gmra.mxu2 %vm1033_vm4, %v3372_v45 }
 0x136   :  { %2089 = vst.msk [vmem:[%s3969_s4 + $0x8] sm:$0xf] %vm2086_vm6, %v2024_v56  ;;  %2404 = vmatmul.msk.bf16.gmra.mxu1 %vm1033_vm4, %v3237_v57  ;;  %2420 = vmatmul.msk.bf16.gmra.mxu3 %vm1033_vm4, %v3059_v32 }
 0x137   :  { %v1769_v11 = vadd.f32 %v3296_v41, %v1701_v6 }
 0x138   :  { %v1548_v26 = vpop.f32.mrf.mxu2 }
 0x139   :  { %vm1833_vm9 = vcmp.gt.f32.partialorder %v1769_v11, 0.0  ;;  %v1897_v28 = vmul.f32 0.2, %v1769_v11  ;;  %v3388_v54 = vpop.f32.mrf.mxu3 }
 0x13a   :  { %v1117_v38 = vpop.f32.mrf.mxu0 }
 0x13b   :  { %v1961_v12 = vsel %vm1833_vm9, %v1769_v11, %v1897_v28  ;;  %v1327_v61 = vadd.f32 %v1326_v24, %v1117_v38  ;;  %v1328_v57 = vpop.f32.mrf.mxu1  ;;  %v641_v11 = vpop.permute.xlu1 %640 }
 0x13c   :  { %v2025_v63 = vpack.c.bf16 %v1961_v12, %v1961_v12  ;;  %v860_v48 = vsel %vm826_vm2, %v3116_v44, %v641_v11  ;;  %v787_v28 = vpop.permute.xlu2 %786 }
 0x13d   :  { %v1702_v4 = vadd.f32 %v1548_v26, %v1327_v61  ;;  %2348 = vmatmul.msk.bf16.gmra.mxu0 %vm1033_vm4, %v3302_v14 }
 0x13e   :  { %2090 = vst.msk [vmem:[%s3969_s4 + $0xc] sm:$0xf] %vm2086_vm6, %v2025_v63  ;;  %v3430_v63 = vsel %vm899_vm3, %v860_v48, %v787_v28 }
 0x13f   :  { %v1770_v53 = vadd.f32 %v3296_v41, %v1702_v4 }
 0x140   :  { %v1550_v19 = vpop.f32.mrf.mxu2 }
 0x141   :  { %vm1834_vm10 = vcmp.gt.f32.partialorder %v1770_v53, 0.0  ;;  %v1898_v51 = vmul.f32 0.2, %v1770_v53  ;;  %v3400_v16 = vpop.f32.mrf.mxu3 }
 0x142   :  { %v1119_v50 = vpop.f32.mrf.mxu0 }
 0x143   :  { %v1962_v10 = vsel %vm1834_vm10, %v1770_v53, %v1898_v51  ;;  %v1329_v15 = vadd.f32 %v1328_v57, %v1119_v50  ;;  %v1331_v35 = vpop.f32.mrf.mxu1 }
 0x144   :  { %v2026_v30 = vpack.c.bf16 %v1962_v10, %v1962_v10 }
 0x145   :  { %v1703_v40 = vadd.f32 %v1550_v19, %v1329_v15  ;;  %2473 = vmatmul.msk.bf16.gmra.mxu2 %vm1033_vm4, %v3403_v17 }
 0x146   :  { %2091 = vst.msk [vmem:[%s3969_s4 + $0x10] sm:$0xf] %vm2086_vm6, %v2026_v30  ;;  %2405 = vmatmul.msk.bf16.gmra.mxu1 %vm1033_vm4, %v3270_v58  ;;  %2421 = vmatmul.msk.bf16.gmra.mxu3 %vm1033_vm4, %v3099_v55 }
 0x147   :  { %v1771_v37 = vadd.f32 %v3296_v41, %v1703_v40 }
 0x148   :  { %v1553_v62 = vpop.f32.mrf.mxu2 }
 0x149   :  { %vm1835_vm11 = vcmp.gt.f32.partialorder %v1771_v37, 0.0  ;;  %v1899_v39 = vmul.f32 0.2, %v1771_v37  ;;  %v3416_v7 = vpop.f32.mrf.mxu3 }
 0x14a   :  { %v1122_v1 = vpop.f32.mrf.mxu0 }
 0x14b   :  { %v1963_v21 = vsel %vm1835_vm11, %v1771_v37, %v1899_v39  ;;  %v1332_v24 = vadd.f32 %v1331_v35, %v1122_v1  ;;  %v1333_v56 = vpop.f32.mrf.mxu1  ;;  %v643_v37 = vpop.permute.xlu0 %642 }
 0x14c   :  { %v2027_v6 = vpack.c.bf16 %v1963_v21, %v1963_v21  ;;  %v862_v1 = vsel %vm826_vm2, %v3138_v36, %v643_v37  ;;  %v789_v21 = vpop.permute.xlu1 %788 }
 0x14d   :  { %v1704_v26 = vadd.f32 %v1553_v62, %v1332_v24  ;;  %2349 = vmatmul.msk.bf16.gmra.mxu0 %vm1033_vm4, %v3338_v59  ;;  %v3465_v48 = vsel %vm899_vm3, %v862_v1, %v789_v21 }
 0x14e   :  { %2092 = vst.msk [vmem:[%s3969_s4 + $0x14] sm:$0xf] %vm2086_vm6, %v2027_v6 }
 0x14f   :  { %v1772_v58 = vadd.f32 %v3296_v41, %v1704_v26 }
 0x150   :  { %v1555_v38 = vpop.f32.mrf.mxu2 }
 0x151   :  { %vm1836_vm12 = vcmp.gt.f32.partialorder %v1772_v58, 0.0  ;;  %v1900_v12 = vmul.f32 0.2, %v1772_v58  ;;  %v3427_v61 = vpop.f32.mrf.mxu3 }
 0x152   :  { %v1124_v57 = vpop.f32.mrf.mxu0 }
 0x153   :  { %v1964_v8 = vsel %vm1836_vm12, %v1772_v58, %v1900_v12  ;;  %v1334_v4 = vadd.f32 %v1333_v56, %v1124_v57  ;;  %v1336_v53 = vpop.f32.mrf.mxu1 }
 0x154   :  { %v2028_v23 = vpack.c.bf16 %v1964_v8, %v1964_v8  ;;  %v131_v8 = vld [vmem:[#allocation4 + $0x20] sm:$0xf] }
 0x155   :  { %v1705_v13 = vadd.f32 %v1555_v38, %v1334_v4  ;;  %2474 = vmatmul.msk.bf16.gmra.mxu2 %vm1033_vm4, %v3430_v63 }
 0x156   :  { %2093 = vst.msk [vmem:[%s3969_s4 + $0x18] sm:$0xf] %vm2086_vm6, %v2028_v23  ;;  %2406 = vmatmul.msk.bf16.gmra.mxu1 %vm1033_vm4, %v3302_v14  ;;  %2422 = vmatmul.msk.bf16.gmra.mxu3 %vm1033_vm4, %v3127_v33  ;;  %v3447_v14 = vld [vmem:[#allocation4 + $0x18] sm:$0xff] }
 0x157   :  { %v1773_v44 = vadd.f32 %v3296_v41, %v1705_v13  ;;  %v750_v24 = vrot.slane %v3447_v14, 1  ;;  %v600_v37 = vshrl.u32 %v3447_v14, 16 }
 0x158   :  { %v1558_v19 = vpop.f32.mrf.mxu2 }
 0x159   :  { %vm1837_vm13 = vcmp.gt.f32.partialorder %v1773_v44, 0.0  ;;  %v1901_v51 = vmul.f32 0.2, %v1773_v44  ;;  %v3443_v50 = vpop.f32.mrf.mxu3  ;;  %v751_v26 = vsel %vm680_vm0, %v748_v60, %v750_v24 }
 0x15a   :  { %v1127_v10 = vpop.f32.mrf.mxu0  ;;  %822 = vrot.lane.b32.xlu0 %v751_v26, %s2627_s23  ;;  %v791_v26 = vpop.permute.xlu0 %790 }
 0x15b   :  { %v1965_v15 = vsel %vm1837_vm13, %v1773_v44, %v1901_v51  ;;  %v1337_v35 = vadd.f32 %v1336_v53, %v1127_v10  ;;  %v1338_v30 = vpop.f32.mrf.mxu1  ;;  %v313_v53 = vunpack.c.l.b16 %v131_v8  ;;  %v596_v51 = vshll.u32 %v3447_v14, 16 }
 0x15c   :  { %v2029_v40 = vpack.c.bf16 %v1965_v15, %v1965_v15 }
 0x15d   :  { %v1706_v62 = vadd.f32 %v1558_v19, %v1337_v35  ;;  %2350 = vmatmul.msk.bf16.gmra.mxu0 %vm1033_vm4, %v3372_v45  ;;  %v3481_v19 = vpack.c.b16 %v313_v53, %v313_v53 }
 0x15e   :  { %2094 = vst.msk [vmem:[%s3969_s4 + $0x1c] sm:$0xf] %vm2086_vm6, %v2029_v40  ;;  %v598_v40 = vrot.slane %v596_v51, 1 }
 0x15f   :  { %v1774_v39 = vadd.f32 %v3296_v41, %v1706_v62  ;;  %v604_v62 = vshll.u32 %v3481_v19, 16 }
 0x160   :  { %v1560_v56 = vpop.f32.mrf.mxu2  ;;  %v602_v1 = vor.u32 %v600_v37, %v598_v40 }
 0x161   :  { %vm1838_vm14 = vcmp.gt.f32.partialorder %v1774_v39, 0.0  ;;  %v1902_v6 = vmul.f32 0.2, %v1774_v39  ;;  %v3457_v11 = vpop.f32.mrf.mxu3  ;;  %v606_v21 = vrot.slane %v604_v62, 1 }
 0x162   :  { %v1129_v58 = vpop.f32.mrf.mxu0 }
 0x163   :  { %v1966_v36 = vsel %vm1838_vm14, %v1774_v39, %v1902_v6  ;;  %v1339_v28 = vadd.f32 %v1338_v30, %v1129_v58  ;;  %v1341_v38 = vpop.f32.mrf.mxu1  ;;  %v645_v30 = vpop.permute.xlu2 %644 }
 0x164   :  { %v2030_v12 = vpack.c.bf16 %v1966_v36, %v1966_v36  ;;  %v864_v6 = vsel %vm826_vm2, %v3166_v0, %v645_v30  ;;  %v607_v36 = vsel %vm315_vm1, %v602_v1, %v606_v21  ;;  %v592_v0 = vshrl.u32 %v2957_v29, 16 }
 0x165   :  { %v1707_v57 = vadd.f32 %v1560_v56, %v1339_v28  ;;  %2475 = vmatmul.msk.bf16.gmra.mxu2 %vm1033_vm4, %v3465_v48  ;;  %678 = vrot.lane.b32.xlu1 %v607_v36, %s2630_s0 }
 0x166   :  { %2095 = vst.msk [vmem:[%s3969_s4 + $0x20] sm:$0xf] %vm2086_vm6, %v2030_v12  ;;  %2407 = vmatmul.msk.bf16.gmra.mxu1 %vm1033_vm4, %v3338_v59  ;;  %2423 = vmatmul.msk.bf16.gmra.mxu3 %vm1033_vm4, %v3152_v25 }
 0x167   :  { %v1775_v60 = vadd.f32 %v3296_v41, %v1707_v57  ;;  %v3500_v57 = vsel %vm899_vm3, %v864_v6, %v791_v26 }
 0x168   :  { %v1563_v4 = vpop.f32.mrf.mxu2 }
 0x169   :  { %vm1839_vm15 = vcmp.gt.f32.partialorder %v1775_v60, 0.0  ;;  %v1903_v23 = vmul.f32 0.2, %v1775_v60  ;;  %v3479_v13 = vpop.f32.mrf.mxu3 }
 0x16a   :  { %v1132_v44 = vpop.f32.mrf.mxu0 }
 0x16b   :  { %v1967_v10 = vsel %vm1839_vm15, %v1775_v60, %v1903_v23  ;;  %v1342_v15 = vadd.f32 %v1341_v38, %v1132_v44  ;;  %v1343_v59 = vpop.f32.mrf.mxu1  ;;  %v594_v44 = vor.u32 %v592_v0, %v2967_v49  ;;  %v793_v21 = vpop.permute.xlu2 %792 }
 0x16c   :  { %v2031_v35 = vpack.c.bf16 %v1967_v10, %v1967_v10 }
 0x16d   :  { %v1708_v39 = vadd.f32 %v1563_v4, %v1342_v15  ;;  %2351 = vmatmul.msk.bf16.gmra.mxu0 %vm1033_vm4, %v3403_v17  ;;  %v599_v10 = vsel %vm315_vm1, %v594_v44, %v598_v40 }
 0x16e   :  { %2096 = vst.msk [vmem:[%s3969_s4 + $0x24] sm:$0xf] %vm2086_vm6, %v2031_v35  ;;  %676 = vrot.lane.b32.xlu2 %v599_v10, %s2630_s0 }
 0x16f   :  { %v1776_v56 = vadd.f32 %v3296_v41, %v1708_v39  ;;  %v647_v39 = vpop.permute.xlu1 %646 }
 0x170   :  { %v1565_v58 = vpop.f32.mrf.mxu2  ;;  %v866_v40 = vsel %vm826_vm2, %v3196_v43, %v647_v39 }
 0x171   :  { %vm1840_vm5 = vcmp.gt.f32.partialorder %v1776_v56, 0.0  ;;  %v1904_v28 = vmul.f32 0.2, %v1776_v56  ;;  %v3496_v38 = vpop.f32.mrf.mxu3  ;;  %v3531_v36 = vsel %vm899_vm3, %v866_v40, %v793_v21 }
 0x172   :  { %v1134_v12 = vpop.f32.mrf.mxu0 }
 0x173   :  { %v1968_v60 = vsel %vm1840_vm5, %v1776_v56, %v1904_v28  ;;  %v1344_v8 = vadd.f32 %v1343_v59, %v1134_v12  ;;  %v1346_v4 = vpop.f32.mrf.mxu1 }
 0x174   :  { %v2032_v53 = vpack.c.bf16 %v1968_v60, %v1968_v60 }
 0x175   :  { %v1709_v23 = vadd.f32 %v1565_v58, %v1344_v8  ;;  %2476 = vmatmul.msk.bf16.gmra.mxu2 %vm1033_vm4, %v3500_v57 }
 0x176   :  { %2097 = vst.msk [vmem:[%s3969_s4 + $0x28] sm:$0xf] %vm2086_vm6, %v2032_v53  ;;  %2408 = vmatmul.msk.bf16.gmra.mxu1 %vm1033_vm4, %v3372_v45  ;;  %2424 = vmatmul.msk.bf16.gmra.mxu3 %vm1033_vm4, %v3183_v27  ;;  %v752_v53 = vrot.slane %v3481_v19, 1 }
 0x177   :  { %v1777_v51 = vadd.f32 %v3296_v41, %v1709_v23 }
 0x178   :  { %v1568_v29 = vpop.f32.mrf.mxu2 }
 0x179   :  { %vm1841_vm7 = vcmp.gt.f32.partialorder %v1777_v51, 0.0  ;;  %v1905_v15 = vmul.f32 0.2, %v1777_v51  ;;  %v3516_v59 = vpop.f32.mrf.mxu3 }
 0x17a   :  { %v1137_v35 = vpop.f32.mrf.mxu0 }
 0x17b   :  { %v1969_v30 = vsel %vm1841_vm7, %v1777_v51, %v1905_v15  ;;  %v1347_v37 = vadd.f32 %v1346_v4, %v1137_v35  ;;  %v1348_v45 = vpop.f32.mrf.mxu1  ;;  %v753_v51 = vsel %vm680_vm0, %v750_v24, %v752_v53 }
 0x17c   :  { %v2033_v62 = vpack.c.bf16 %v1969_v30, %v1969_v30  ;;  %824 = vrot.lane.b32.xlu2 %v753_v51, %s2627_s23  ;;  %v649_v30 = vpop.permute.xlu0 %648  ;;  %v651_v51 = vpop.permute.xlu2 %650 }
 0x17d   :  { %v1710_v1 = vadd.f32 %v1568_v29, %v1347_v37  ;;  %2352 = vmatmul.msk.bf16.gmra.mxu0 %vm1033_vm4, %v3430_v63  ;;  %v868_v24 = vsel %vm826_vm2, %v3219_v47, %v649_v30 }
 0x17e   :  { %2098 = vst.msk [vmem:[%s3969_s4 + $0x2c] sm:$0xf] %vm2086_vm6, %v2033_v62 }
 0x17f   :  { %v1778_v49 = vadd.f32 %v3296_v41, %v1710_v1 }
 0x180   :  { %v1570_v56 = vpop.f32.mrf.mxu2 }
 0x181   :  { %vm1842_vm1 = vcmp.gt.f32.partialorder %v1778_v49, 0.0  ;;  %v1906_v6 = vmul.f32 0.2, %v1778_v49  ;;  %v3528_v26 = vpop.f32.mrf.mxu3 }
 0x182   :  { %v1139_v58 = vpop.f32.mrf.mxu0 }
 0x183   :  { %v1970_v28 = vsel %vm1842_vm1, %v1778_v49, %v1906_v6  ;;  %v1349_v12 = vadd.f32 %v1348_v45, %v1139_v58  ;;  %v1351_v60 = vpop.f32.mrf.mxu1  ;;  %v795_v45 = vpop.permute.xlu1 %794 }
 0x184   :  { %v2034_v8 = vpack.c.bf16 %v1970_v28, %v1970_v28  ;;  %v3563_v40 = vsel %vm899_vm3, %v868_v24, %v795_v45 }
 0x185   :  { %v1711_v4 = vadd.f32 %v1570_v56, %v1349_v12  ;;  %2477 = vmatmul.msk.bf16.gmra.mxu2 %vm1033_vm4, %v3531_v36 }
 0x186   :  { %2099 = vst.msk [vmem:[%s3969_s4 + $0x30] sm:$0xf] %vm2086_vm6, %v2034_v8  ;;  %2409 = vmatmul.msk.bf16.gmra.mxu1 %vm1033_vm4, %v3403_v17  ;;  %2425 = vmatmul.msk.bf16.gmra.mxu3 %vm1033_vm4, %v3208_v52 }
 0x187   :  { %v1779_v43 = vadd.f32 %v3296_v41, %v1711_v4 }
 0x188   :  { %v1573_v0 = vpop.f32.mrf.mxu2 }
 0x189   :  { %vm1843_vm8 = vcmp.gt.f32.partialorder %v1779_v43, 0.0  ;;  %v1907_v23 = vmul.f32 0.2, %v1779_v43  ;;  %v3545_v44 = vpop.f32.mrf.mxu3 }
 0x18a   :  { %v1142_v29 = vpop.f32.mrf.mxu0 }
 0x18b   :  { %v1971_v17 = vsel %vm1843_vm8, %v1779_v43, %v1907_v23  ;;  %v1352_v10 = vadd.f32 %v1351_v60, %v1142_v29  ;;  %v1353_v15 = vpop.f32.mrf.mxu1 }
 0x18c   :  { %v2035_v35 = vpack.c.bf16 %v1971_v17, %v1971_v17  ;;  %v797_v17 = vpop.permute.xlu0 %796 }
 0x18d   :  { %v1712_v37 = vadd.f32 %v1573_v0, %v1352_v10  ;;  %2353 = vmatmul.msk.bf16.gmra.mxu0 %vm1033_vm4, %v3465_v48 }
 0x18e   :  { %2100 = vst.msk [vmem:[%s3969_s4 + $0x34] sm:$0xf] %vm2086_vm6, %v2035_v35 }
 0x18f   :  { %v1780_v19 = vadd.f32 %v3296_v41, %v1712_v37 }
 0x190   :  { %v1575_v62 = vpop.f32.mrf.mxu2 }
 0x191   :  { %vm1844_vm0 = vcmp.gt.f32.partialorder %v1780_v19, 0.0  ;;  %v1908_v39 = vmul.f32 0.2, %v1780_v19  ;;  %v3560_v1 = vpop.f32.mrf.mxu3 }
 0x192   :  { %v1144_v49 = vpop.f32.mrf.mxu0 }
 0x193   :  { %v1972_v21 = vsel %vm1844_vm0, %v1780_v19, %v1908_v39  ;;  %v1354_v56 = vadd.f32 %v1353_v15, %v1144_v49  ;;  %v1356_v6 = vpop.f32.mrf.mxu1 }
 0x194   :  { %v2036_v58 = vpack.c.bf16 %v1972_v21, %v1972_v21 }
 0x195   :  { %v1713_v28 = vadd.f32 %v1575_v62, %v1354_v56  ;;  %2478 = vmatmul.msk.bf16.gmra.mxu2 %vm1033_vm4, %v3563_v40 }
 0x196   :  { %2101 = vst.msk [vmem:[%s3969_s4 + $0x38] sm:$0xf] %vm2086_vm6, %v2036_v58  ;;  %2410 = vmatmul.msk.bf16.gmra.mxu1 %vm1033_vm4, %v3430_v63  ;;  %2486 = vmatmul.msk.bf16.vlgmr.msra.gmra.mxu3 %vm1033_vm4, %v3127_v33  ;;  %v870_v63 = vsel %vm826_vm2, %v3247_v31, %v651_v51 }
 0x197   :  { %v1781_v47 = vadd.f32 %v3296_v41, %v1713_v28  ;;  %v3590_v37 = vsel %vm899_vm3, %v870_v63, %v797_v17 }
 0x198   :  { %v1578_v12 = vpop.f32.mrf.mxu2 }
 0x199   :  { %vm1845_vm9 = vcmp.gt.f32.partialorder %v1781_v47, 0.0  ;;  %v1909_v60 = vmul.f32 0.2, %v1781_v47  ;;  %v3576_v8 = vpop.f32.mrf.mxu3 }
 0x19a   :  { %v1147_v4 = vpop.f32.mrf.mxu0 }
 0x19b   :  { %v1973_v43 = vsel %vm1845_vm9, %v1781_v47, %v1909_v60  ;;  %v1357_v53 = vadd.f32 %v1356_v6, %v1147_v4  ;;  %v1358_v0 = vpop.f32.mrf.mxu1  ;;  %v653_v60 = vpop.permute.xlu1 %652 }
 0x19c   :  { %v2037_v23 = vpack.c.bf16 %v1973_v43, %v1973_v43  ;;  %v799_v43 = vpop.permute.xlu2 %798 }
 0x19d   :  { %v1714_v29 = vadd.f32 %v1578_v12, %v1357_v53  ;;  %2354 = vmatmul.msk.bf16.gmra.mxu0 %vm1033_vm4, %v3500_v57 }
 0x19e   :  { %2102 = vst.msk [vmem:[%s3969_s4 + $0x3c] sm:$0xf] %vm2086_vm6, %v2037_v23 }
 0x19f   :  { %v1782_v33 = vadd.f32 %v3296_v41, %v1714_v29 }
 0x1a0   :  { %v1580_v10 = vpop.f32.mrf.mxu2 }
 0x1a1   :  { %vm1846_vm10 = vcmp.gt.f32.partialorder %v1782_v33, 0.0  ;;  %v1910_v15 = vmul.f32 0.2, %v1782_v33  ;;  %v3587_v35 = vpop.f32.mrf.mxu3 }
 0x1a2   :  { %v1149_v30 = vpop.f32.mrf.mxu0 }
 0x1a3   :  { %v1974_v19 = vsel %vm1846_vm10, %v1782_v33, %v1910_v15  ;;  %v1359_v24 = vadd.f32 %v1358_v0, %v1149_v30  ;;  %v1361_v45 = vpop.f32.mrf.mxu1 }
 0x1a4   :  { %v2038_v62 = vpack.c.bf16 %v1974_v19, %v1974_v19 }
 0x1a5   :  { %v1715_v39 = vadd.f32 %v1580_v10, %v1359_v24  ;;  %2479 = vmatmul.msk.bf16.gmra.mxu2 %vm1033_vm4, %v3590_v37 }
 0x1a6   :  { %2103 = vst.msk [vmem:[%s3969_s4 + $0x40] sm:$0xf] %vm2086_vm6, %v2038_v62  ;;  %2411 = vmatmul.msk.bf16.gmra.mxu1 %vm1033_vm4, %v3465_v48  ;;  %2487 = vmatmul.msk.bf16.gmra.mxu3 %vm1033_vm4, %v3152_v25  ;;  %v872_v48 = vsel %vm826_vm2, %v3280_v42, %v653_v60 }
 0x1a7   :  { %v1783_v31 = vadd.f32 %v3296_v41, %v1715_v39  ;;  %v3617_v29 = vsel %vm899_vm3, %v872_v48, %v799_v43 }
 0x1a8   :  { %v1583_v49 = vpop.f32.mrf.mxu2 }
 0x1a9   :  { %vm1847_vm11 = vcmp.gt.f32.partialorder %v1783_v31, 0.0  ;;  %v1911_v21 = vmul.f32 0.2, %v1783_v31  ;;  %v3603_v56 = vpop.f32.mrf.mxu3 }
 0x1aa   :  { %v1152_v6 = vpop.f32.mrf.mxu0 }
 0x1ab   :  { %v1975_v58 = vsel %vm1847_vm11, %v1783_v31, %v1911_v21  ;;  %v1362_v28 = vadd.f32 %v1361_v45, %v1152_v6  ;;  %v1363_v47 = vpop.f32.mrf.mxu1  ;;  %v655_v21 = vpop.permute.xlu0 %654 }
 0x1ac   :  { %v2039_v12 = vpack.c.bf16 %v1975_v58, %v1975_v58  ;;  %v801_v58 = vpop.permute.xlu1 %800 }
 0x1ad   :  { %v1716_v4 = vadd.f32 %v1583_v49, %v1362_v28  ;;  %2355 = vmatmul.msk.bf16.gmra.mxu0 %vm1033_vm4, %v3531_v36 }
 0x1ae   :  { %2104 = vst.msk [vmem:[%s3969_s4 + $0x44] sm:$0xf] %vm2086_vm6, %v2039_v12 }
 0x1af   :  { %v1784_v25 = vadd.f32 %v3296_v41, %v1716_v4 }
 0x1b0   :  { %v1585_v53 = vpop.f32.mrf.mxu2 }
 0x1b1   :  { %vm1848_vm12 = vcmp.gt.f32.partialorder %v1784_v25, 0.0  ;;  %v1912_v0 = vmul.f32 0.2, %v1784_v25  ;;  %v3614_v23 = vpop.f32.mrf.mxu3 }
 0x1b2   :  { %v1154_v51 = vpop.f32.mrf.mxu0 }
 0x1b3   :  { %v1976_v33 = vsel %vm1848_vm12, %v1784_v25, %v1912_v0  ;;  %v1364_v63 = vadd.f32 %v1363_v47, %v1154_v51  ;;  %v1366_v17 = vpop.f32.mrf.mxu1 }
 0x1b4   :  { %v2040_v10 = vpack.c.bf16 %v1976_v33, %v1976_v33 }
 0x1b5   :  { %v1717_v15 = vadd.f32 %v1585_v53, %v1364_v63  ;;  %2480 = vmatmul.msk.bf16.gmra.mxu2 %vm1033_vm4, %v3617_v29 }
 0x1b6   :  { %2105 = vst.msk [vmem:[%s3969_s4 + $0x48] sm:$0xf] %vm2086_vm6, %v2040_v10  ;;  %2412 = vmatmul.msk.bf16.gmra.mxu1 %vm1033_vm4, %v3500_v57  ;;  %2488 = vmatmul.msk.bf16.gmra.mxu3 %vm1033_vm4, %v3183_v27  ;;  %v874_v57 = vsel %vm826_vm2, %v3313_v34, %v655_v21 }
 0x1b7   :  { %v1785_v42 = vadd.f32 %v3296_v41, %v1717_v15  ;;  %v3644_v4 = vsel %vm899_vm3, %v874_v57, %v801_v58 }
 0x1b8   :  { %v1588_v30 = vpop.f32.mrf.mxu2 }
 0x1b9   :  { %vm1849_vm13 = vcmp.gt.f32.partialorder %v1785_v42, 0.0  ;;  %v1913_v19 = vmul.f32 0.2, %v1785_v42  ;;  %v3630_v24 = vpop.f32.mrf.mxu3 }
 0x1ba   :  { %v1157_v45 = vpop.f32.mrf.mxu0 }
 0x1bb   :  { %v1977_v62 = vsel %vm1849_vm13, %v1785_v42, %v1913_v19  ;;  %v1367_v39 = vadd.f32 %v1366_v17, %v1157_v45  ;;  %v1368_v31 = vpop.f32.mrf.mxu1 }
 0x1bc   :  { %v2041_v49 = vpack.c.bf16 %v1977_v62, %v1977_v62 }
 0x1bd   :  { %v1718_v6 = vadd.f32 %v1588_v30, %v1367_v39  ;;  %2356 = vmatmul.msk.bf16.gmra.mxu0 %vm1033_vm4, %v3563_v40 }
 0x1be   :  { %2106 = vst.msk [vmem:[%s3969_s4 + $0x4c] sm:$0xf] %vm2086_vm6, %v2041_v49 }
 0x1bf   :  { %v1786_v27 = vadd.f32 %v3296_v41, %v1718_v6 }
 0x1c0   :  { %v1590_v28 = vpop.f32.mrf.mxu2 }
 0x1c1   :  { %vm1850_vm14 = vcmp.gt.f32.partialorder %v1786_v27, 0.0  ;;  %v1914_v47 = vmul.f32 0.2, %v1786_v27  ;;  %v3641_v12 = vpop.f32.mrf.mxu3 }
 0x1c2   :  { %v1159_v60 = vpop.f32.mrf.mxu0 }
 0x1c3   :  { %v1978_v25 = vsel %vm1850_vm14, %v1786_v27, %v1914_v47  ;;  %v1369_v48 = vadd.f32 %v1368_v31, %v1159_v60  ;;  %v1371_v43 = vpop.f32.mrf.mxu1 }
 0x1c4   :  { %v2042_v53 = vpack.c.bf16 %v1978_v25, %v1978_v25 }
 0x1c5   :  { %v1719_v0 = vadd.f32 %v1590_v28, %v1369_v48  ;;  %2481 = vmatmul.msk.bf16.gmra.mxu2 %vm1033_vm4, %v3644_v4 }
 0x1c6   :  { %2107 = vst.msk [vmem:[%s3969_s4 + $0x50] sm:$0xf] %vm2086_vm6, %v2042_v53  ;;  %2413 = vmatmul.msk.bf16.gmra.mxu1 %vm1033_vm4, %v3531_v36  ;;  %2489 = vmatmul.msk.bf16.gmra.mxu3 %vm1033_vm4, %v3208_v52 }
 0x1c7   :  { %v1787_v34 = vadd.f32 %v3296_v41, %v1719_v0 }
 0x1c8   :  { %v1593_v51 = vpop.f32.mrf.mxu2 }
 0x1c9   :  { %vm1851_vm15 = vcmp.gt.f32.partialorder %v1787_v34, 0.0  ;;  %v1915_v33 = vmul.f32 0.2, %v1787_v34  ;;  %v3657_v63 = vpop.f32.mrf.mxu3 }
 0x1ca   :  { %v1162_v17 = vpop.f32.mrf.mxu0 }
 0x1cb   :  { %v1979_v10 = vsel %vm1851_vm15, %v1787_v34, %v1915_v33  ;;  %v1372_v15 = vadd.f32 %v1371_v43, %v1162_v17  ;;  %v1373_v42 = vpop.f32.mrf.mxu1 }
 0x1cc   :  { %v2043_v30 = vpack.c.bf16 %v1979_v10, %v1979_v10 }
 0x1cd   :  { %v1720_v19 = vadd.f32 %v1593_v51, %v1372_v15  ;;  %2357 = vmatmul.msk.bf16.gmra.mxu0 %vm1033_vm4, %v3590_v37 }
 0x1ce   :  { %2108 = vst.msk [vmem:[%s3969_s4 + $0x54] sm:$0xf] %vm2086_vm6, %v2043_v30 }
 0x1cf   :  { %v1788_v52 = vadd.f32 %v3296_v41, %v1720_v19 }
 0x1d0   :  { %v1595_v36 = vpop.f32.mrf.mxu2 }
 0x1d1   :  { %vm1852_vm5 = vcmp.gt.f32.partialorder %v1788_v52, 0.0  ;;  %v1916_v45 = vmul.f32 0.2, %v1788_v52  ;;  %v3666_v62 = vpop.f32.mrf.mxu3 }
 0x1d2   :  { %v1164_v39 = vpop.f32.mrf.mxu0 }
 0x1d3   :  { %v1980_v31 = vsel %vm1852_vm5, %v1788_v52, %v1916_v45  ;;  %v1374_v49 = vadd.f32 %v1373_v42, %v1164_v39  ;;  %v1376_v21 = vpop.f32.mrf.mxu1 }
 0x1d4   :  { %v2044_v6 = vpack.c.bf16 %v1980_v31, %v1980_v31 }
 0x1d5   :  { %v1721_v27 = vadd.f32 %v1595_v36, %v1374_v49  ;;  %2482 = vmatmul.msk.bf16.gmra.mxu2 %vm1033_vm4, %v3299_v9 }
 0x1d6   :  { %2109 = vst.msk [vmem:[%s3969_s4 + $0x58] sm:$0xf] %vm2086_vm6, %v2044_v6  ;;  %2414 = vmatmul.msk.bf16.gmra.mxu1 %vm1033_vm4, %v3563_v40  ;;  %2490 = vmatmul.msk.bf16.gmra.mxu3 %vm1033_vm4, %v3233_v20 }
 0x1d7   :  { %v1789_v57 = vadd.f32 %v3296_v41, %v1721_v27 }
 0x1d8   :  { %v1598_v58 = vpop.f32.mrf.mxu2 }
 0x1d9   :  { %vm1853_vm7 = vcmp.gt.f32.partialorder %v1789_v57, 0.0  ;;  %v1917_v28 = vmul.f32 0.2, %v1789_v57  ;;  %v3679_v47 = vpop.f32.mrf.mxu3 }
 0x1da   :  { %v1167_v60 = vpop.f32.mrf.mxu0 }
 0x1db   :  { %v1981_v25 = vsel %vm1853_vm7, %v1789_v57, %v1917_v28  ;;  %v1377_v48 = vadd.f32 %v1376_v21, %v1167_v60  ;;  %v1378_v43 = vpop.f32.mrf.mxu1  ;;  %v823_v60 = vpop.permute.xlu0 %822 }
 0x1dc   :  { %v2045_v53 = vpack.c.bf16 %v1981_v25, %v1981_v25 }
 0x1dd   :  { %v1722_v0 = vadd.f32 %v1598_v58, %v1377_v48  ;;  %2358 = vmatmul.msk.bf16.gmra.mxu0 %vm1033_vm4, %v3617_v29  ;;  %v2572_v58 = vld [vmem:[#allocation4 + $0x10] sm:$0xff] }
 0x1de   :  { %2110 = vst.msk [vmem:[%s3969_s4 + $0x5c] sm:$0xf] %vm2086_vm6, %v2045_v53 }
 0x1df   :  { %v1790_v20 = vadd.f32 %v3296_v41, %v1722_v0 }
 0x1e0   :  { %v1600_v40 = vpop.f32.mrf.mxu2 }
 0x1e1   :  { %vm1854_vm1 = vcmp.gt.f32.partialorder %v1790_v20, 0.0  ;;  %v1918_v34 = vmul.f32 0.2, %v1790_v20  ;;  %v3688_v51 = vpop.f32.mrf.mxu3 }
 0x1e2   :  { %v1169_v33 = vpop.f32.mrf.mxu0 }
 0x1e3   :  { %v1982_v17 = vsel %vm1854_vm1, %v1790_v20, %v1918_v34  ;;  %v1379_v10 = vadd.f32 %v1378_v43, %v1169_v33  ;;  %v1381_v15 = vpop.f32.mrf.mxu1 }
 0x1e4   :  { %v2046_v42 = vpack.c.bf16 %v1982_v17, %v1982_v17 }
 0x1e5   :  { %v1723_v30 = vadd.f32 %v1600_v40, %v1379_v10  ;;  %2483 = vmatmul.msk.bf16.gmra.mxu2 %vm1033_vm4, %v3334_v22 }
 0x1e6   :  { %2111 = vst.msk [vmem:[%s3969_s4 + $0x60] sm:$0xf] %vm2086_vm6, %v2046_v42  ;;  %2415 = vmatmul.msk.bf16.gmra.mxu1 %vm1033_vm4, %v3590_v37  ;;  %2491 = vmatmul.msk.bf16.gmra.mxu3 %vm1033_vm4, %v3267_v2  ;;  %v677_v37 = vpop.permute.xlu2 %676 }
 0x1e7   :  { %v1791_v19 = vadd.f32 %v3296_v41, %v1723_v30  ;;  %v896_v28 = vsel %vm826_vm2, %v2572_v58, %v677_v37 }
 0x1e8   :  { %v1603_v52 = vpop.f32.mrf.mxu2  ;;  %v969_v40 = vsel %vm899_vm3, %v896_v28, %v823_v60 }
 0x1e9   :  { %vm1855_vm8 = vcmp.gt.f32.partialorder %v1791_v19, 0.0  ;;  %v1919_v36 = vmul.f32 0.2, %v1791_v19  ;;  %v3701_v45 = vpop.f32.mrf.mxu3 }
 0x1ea   :  { %v1172_v39 = vpop.f32.mrf.mxu0 }
 0x1eb   :  { %v1983_v31 = vsel %vm1855_vm8, %v1791_v19, %v1919_v36  ;;  %v1382_v49 = vadd.f32 %v1381_v15, %v1172_v39  ;;  %v1383_v21 = vpop.f32.mrf.mxu1 }
 0x1ec   :  { %v2047_v6 = vpack.c.bf16 %v1983_v31, %v1983_v31  ;;  %v679_v31 = vpop.permute.xlu1 %678 }
 0x1ed   :  { %v1724_v27 = vadd.f32 %v1603_v52, %v1382_v49  ;;  %2359 = vmatmul.msk.bf16.gmra.mxu0 %vm1033_vm4, %v3644_v4 }
 0x1ee   :  { %2112 = vst.msk [vmem:[%s3969_s4 + $0x64] sm:$0xf] %vm2086_vm6, %v2047_v6  ;;  %v825_v6 = vpop.permute.xlu2 %824 }
 0x1ef   :  { %v1792_v2 = vadd.f32 %v3296_v41, %v1724_v27 }
 0x1f0   :  { %v1605_v57 = vpop.f32.mrf.mxu2 }
 0x1f1   :  { %vm1856_vm0 = vcmp.gt.f32.partialorder %v1792_v2, 0.0  ;;  %v1920_v25 = vmul.f32 0.2, %v1792_v2  ;;  %v3711_v48 = vpop.f32.mrf.mxu3 }
 0x1f2   :  { %v1174_v43 = vpop.f32.mrf.mxu0 }
 0x1f3   :  { %v1984_v53 = vsel %vm1856_vm0, %v1792_v2, %v1920_v25  ;;  %v1384_v0 = vadd.f32 %v1383_v21, %v1174_v43  ;;  %v1386_v20 = vpop.f32.mrf.mxu1  ;;  %v898_v21 = vsel %vm826_vm2, %v3447_v14, %v679_v31 }
 0x1f4   :  { %v2048_v34 = vpack.c.bf16 %v1984_v53, %v1984_v53  ;;  %v971_v28 = vsel %vm899_vm3, %v898_v21, %v825_v6 }
 0x1f5   :  { %v1725_v33 = vadd.f32 %v1605_v57, %v1384_v0  ;;  %2484 = vmatmul.msk.bf16.gmra.mxu2 %vm1033_vm4, %v3059_v32 }
 0x1f6   :  { %2113 = vst.msk [vmem:[%s3969_s4 + $0x68] sm:$0xf] %vm2086_vm6, %v2048_v34  ;;  %2416 = vmatmul.msk.bf16.gmra.mxu1 %vm1033_vm4, %v3617_v29  ;;  %2492 = vmatmul.msk.bf16.gmra.mxu3 %vm1033_vm4, %v969_v40 }
 0x1f7   :  { %v1793_v17 = vadd.f32 %v3296_v41, %v1725_v33 }
 0x1f8   :  { %v1608_v10 = vpop.f32.mrf.mxu2 }
 0x1f9   :  { %vm1857_vm9 = vcmp.gt.f32.partialorder %v1793_v17, 0.0  ;;  %v1921_v15 = vmul.f32 0.2, %v1793_v17  ;;  %v3724_v42 = vpop.f32.mrf.mxu3 }
 0x1fa   :  { %v1177_v30 = vpop.f32.mrf.mxu0 }
 0x1fb   :  { %v1985_v19 = vsel %vm1857_vm9, %v1793_v17, %v1921_v15  ;;  %v1387_v32 = vadd.f32 %v1386_v20, %v1177_v30  ;;  %v1388_v52 = vpop.f32.mrf.mxu1 }
 0x1fc   :  { %v2049_v36 = vpack.c.bf16 %v1985_v19, %v1985_v19 }
 0x1fd   :  { %v1726_v39 = vadd.f32 %v1608_v10, %v1387_v32  ;;  %2360 = vmatmul.msk.bf16.gmra.mxu0 %vm1033_vm4, %v3299_v9 }
 0x1fe   :  { %2114 = vst.msk [vmem:[%s3969_s4 + $0x6c] sm:$0xf] %vm2086_vm6, %v2049_v36 }
 0x1ff   :  { %v1794_v29 = vadd.f32 %v3296_v41, %v1726_v39  ;;  %v3750_v41 = vld [vmem:[%s3968_s3] ss:$0 sm:$0xff] }
 0x200   :  { %v1610_v49 = vpop.f32.mrf.mxu2 }
 0x201   :  { %vm1858_vm10 = vcmp.gt.f32.partialorder %v1794_v29, 0.0  ;;  %v1922_v27 = vmul.f32 0.2, %v1794_v29  ;;  %v3735_v37 = vpop.f32.mrf.mxu3 }
 0x202   :  { %v1179_v2 = vpop.f32.mrf.mxu0 }
 0x203   :  { %v1986_v57 = vsel %vm1858_vm10, %v1794_v29, %v1922_v27  ;;  %v1389_v9 = vadd.f32 %v1388_v52, %v1179_v2  ;;  %v1391_v58 = vpop.f32.mrf.mxu1  ;;  %v1437_v29 = vadd.f32 %v3576_v8, %v3311_v5 }
 0x204   :  { %v2050_v60 = vpack.c.bf16 %v1986_v57, %v1986_v57 }
 0x205   :  { %v1727_v25 = vadd.f32 %v1610_v49, %v1389_v9  ;;  %2485 = vmatmul.msk.bf16.gmra.mxu2 %vm1033_vm4, %v3099_v55 }
 0x206   :  { %2115 = vst.msk [vmem:[%s3969_s4 + $0x70] sm:$0xf] %vm2086_vm6, %v2050_v60  ;;  %2417 = vmatmul.msk.bf16.gmra.mxu1 %vm1033_vm4, %v3644_v4  ;;  %2493 = vmatmul.msk.bf16.gmra.mxu3 %vm1033_vm4, %v971_v28 }
 0x207   :  { %v1795_v14 = vadd.f32 %v3750_v41, %v1727_v25 }
 0x208   :  { %v1613_v43 = vpop.f32.mrf.mxu2 }
 0x209   :  { %vm1859_vm2 = vcmp.gt.f32.partialorder %v1795_v14, 0.0  ;;  %v1923_v55 = vmul.f32 0.2, %v1795_v14  ;;  %v3753_v53 = vpop.f32.mrf.mxu3 }
 0x20a   :  { %v1182_v0 = vpop.f32.mrf.mxu0 }
 0x20b   :  { %v1987_v20 = vsel %vm1859_vm2, %v1795_v14, %v1923_v55  ;;  %v1392_v40 = vadd.f32 %v1391_v58, %v1182_v0  ;;  %v1393_v34 = vpop.f32.mrf.mxu1  ;;  %v1439_v14 = vadd.f32 %v3587_v35, %v3330_v18 }
 0x20c   :  { %v2051_v33 = vpack.c.bf16 %v1987_v20, %v1987_v20 }
 0x20d   :  { %v1728_v4 = vadd.f32 %v1613_v43, %v1392_v40  ;;  %2361 = vmatmul.msk.bf16.gmra.mxu0 %vm1033_vm4, %v3334_v22 }
 0x20e   :  { %2116 = vst.msk [vmem:[%s3969_s4 + $0x74] sm:$0xf] %vm2086_vm6, %v2051_v33 }
 0x20f   :  { %v1796_v17 = vadd.f32 %v3750_v41, %v1728_v4 }
 0x210   :  { %v1615_v10 = vpop.f32.mrf.mxu2 }
 0x211   :  { %vm1860_vm3 = vcmp.gt.f32.partialorder %v1796_v17, 0.0  ;;  %v1924_v15 = vmul.f32 0.2, %v1796_v17  ;;  %v3762_v30 = vpop.f32.mrf.mxu3 }
 0x212   :  { %v1184_v19 = vpop.f32.mrf.mxu0 }
 0x213   :  { %v1988_v32 = vsel %vm1860_vm3, %v1796_v17, %v1924_v15  ;;  %v1394_v52 = vadd.f32 %v1393_v34, %v1184_v19  ;;  %v1396_v36 = vpop.f32.mrf.mxu1 }
 0x214   :  { %v2052_v39 = vpack.c.bf16 %v1988_v32, %v1988_v32 }
 0x215   :  { %v1729_v31 = vadd.f32 %v1615_v10, %v1394_v52  ;;  %v1442_v52 = vadd.f32 %v3603_v56, %v3353_v3 }
 0x216   :  { %2117 = vst.msk [vmem:[%s3969_s4 + $0x78] sm:$0xf] %vm2086_vm6, %v2052_v39 }
 0x217   :  { %v1797_v22 = vadd.f32 %v3750_v41, %v1729_v31 }
 0x218   :  { %v1618_v49 = vpop.f32.mrf.mxu2 }
 0x219   :  { %vm1861_vm4 = vcmp.gt.f32.partialorder %v1797_v22, 0.0  ;;  %v1925_v21 = vmul.f32 0.2, %v1797_v22  ;;  %v1658_v6 = vpop.f32.mrf.mxu3 }
 0x21a   :  { %v1746_v27 = vadd.f32 %v1658_v6, %v1437_v29  ;;  %v1187_v2 = vpop.f32.mrf.mxu0 }
 0x21b   :  { %v1989_v57 = vsel %vm1861_vm4, %v1797_v22, %v1925_v21  ;;  %v1397_v9 = vadd.f32 %v1396_v36, %v1187_v2  ;;  %v1398_v58 = vpop.f32.mrf.mxu1 }
 0x21c   :  { %v2053_v28 = vpack.c.bf16 %v1989_v57, %v1989_v57  ;;  %v1814_v60 = vadd.f32 %v3750_v41, %v1746_v27 }
 0x21d   :  { %v1730_v25 = vadd.f32 %v1618_v49, %v1397_v9 }
 0x21e   :  { %2118 = vst.msk [vmem:[%s3969_s4 + $0x7c] sm:$0xf] %vm2086_vm6, %v2053_v28  ;;  %vm1878_vm11 = vcmp.gt.f32.partialorder %v1814_v60, 0.0  ;;  %v1942_v5 = vmul.f32 0.2, %v1814_v60  ;;  %v1444_v28 = vadd.f32 %v3614_v23, %v3368_v46 }
 0x21f   :  { %v1798_v8 = vadd.f32 %v3750_v41, %v1730_v25 }
 0x220   :  { %v2006_v43 = vsel %vm1878_vm11, %v1814_v60, %v1942_v5  ;;  %v1620_v55 = vpop.f32.mrf.mxu2 }
 0x221   :  { %v2070_v0 = vpack.c.bf16 %v2006_v43, %v2006_v43  ;;  %vm1862_vm12 = vcmp.gt.f32.partialorder %v1798_v8, 0.0  ;;  %v1926_v20 = vmul.f32 0.2, %v1798_v8  ;;  %v1660_v40 = vpop.f32.mrf.mxu3 }
 0x222   :  { %v1747_v34 = vadd.f32 %v1660_v40, %v1439_v14  ;;  %v1189_v33 = vpop.f32.mrf.mxu0 }
 0x223   :  { %2135 = vst.msk [vmem:[%s3969_s4 + $0xc0] sm:$0xf] %vm2086_vm6, %v2070_v0  ;;  %v1990_v4 = vsel %vm1862_vm12, %v1798_v8, %v1926_v20  ;;  %v1399_v17 = vadd.f32 %v1398_v58, %v1189_v33  ;;  %v1401_v10 = vpop.f32.mrf.mxu1 }
 0x224   :  { %v2054_v15 = vpack.c.bf16 %v1990_v4, %v1990_v4  ;;  %v1815_v19 = vadd.f32 %v3750_v41, %v1747_v34 }
 0x225   :  { %v1731_v18 = vadd.f32 %v1620_v55, %v1399_v17  ;;  %v1447_v17 = vadd.f32 %v3630_v24, %v3388_v54 }
 0x226   :  { %2119 = vst.msk [vmem:[%s3969_s4 + $0x80] sm:$0xf] %vm2086_vm6, %v2054_v15  ;;  %vm1879_vm13 = vcmp.gt.f32.partialorder %v1815_v19, 0.0  ;;  %v1943_v35 = vmul.f32 0.2, %v1815_v19 }
 0x227   :  { %v1799_v32 = vadd.f32 %v3750_v41, %v1731_v18 }
 0x228   :  { %v2007_v36 = vsel %vm1879_vm13, %v1815_v19, %v1943_v35  ;;  %v1623_v39 = vpop.f32.mrf.mxu2 }
 0x229   :  { %v2071_v31 = vpack.c.bf16 %v2007_v36, %v2007_v36  ;;  %vm1863_vm14 = vcmp.gt.f32.partialorder %v1799_v32, 0.0  ;;  %v1927_v22 = vmul.f32 0.2, %v1799_v32  ;;  %v1663_v29 = vpop.f32.mrf.mxu3 }
 0x22a   :  { %v1748_v49 = vadd.f32 %v1663_v29, %v1442_v52  ;;  %v1192_v21 = vpop.f32.mrf.mxu0 }
 0x22b   :  { %2136 = vst.msk [vmem:[%s3969_s4 + $0xc4] sm:$0xf] %vm2086_vm6, %v2071_v31  ;;  %v1991_v6 = vsel %vm1863_vm14, %v1799_v32, %v1927_v22  ;;  %v1402_v27 = vadd.f32 %v1401_v10, %v1192_v21  ;;  %v1403_v2 = vpop.f32.mrf.mxu1  ;;  %v1449_v21 = vadd.f32 %v3641_v12, %v3400_v16 }
 0x22c   :  { %v2055_v57 = vpack.c.bf16 %v1991_v6, %v1991_v6  ;;  %v1816_v9 = vadd.f32 %v3750_v41, %v1748_v49 }
 0x22d   :  { %v1732_v3 = vadd.f32 %v1623_v39, %v1402_v27 }
 0x22e   :  { %2120 = vst.msk [vmem:[%s3969_s4 + $0x84] sm:$0xf] %vm2086_vm6, %v2055_v57  ;;  %vm1880_vm15 = vcmp.gt.f32.partialorder %v1816_v9, 0.0  ;;  %v1944_v56 = vmul.f32 0.2, %v1816_v9 }
 0x22f   :  { %v1800_v58 = vadd.f32 %v3750_v41, %v1732_v3 }
 0x230   :  { %v2008_v60 = vsel %vm1880_vm15, %v1816_v9, %v1944_v56  ;;  %v1625_v25 = vpop.f32.mrf.mxu2 }
 0x231   :  { %v2072_v5 = vpack.c.bf16 %v2008_v60, %v2008_v60  ;;  %vm1864_vm5 = vcmp.gt.f32.partialorder %v1800_v58, 0.0  ;;  %v1928_v8 = vmul.f32 0.2, %v1800_v58  ;;  %v1665_v14 = vpop.f32.mrf.mxu3 }
 0x232   :  { %v1749_v43 = vadd.f32 %v1665_v14, %v1444_v28  ;;  %v1194_v55 = vpop.f32.mrf.mxu0  ;;  %v1452_v14 = vadd.f32 %v3657_v63, %v3416_v7 }
 0x233   :  { %2137 = vst.msk [vmem:[%s3969_s4 + $0xc8] sm:$0xf] %vm2086_vm6, %v2072_v5  ;;  %v1992_v0 = vsel %vm1864_vm5, %v1800_v58, %v1928_v8  ;;  %v1404_v20 = vadd.f32 %v1403_v2, %v1194_v55  ;;  %v1406_v40 = vpop.f32.mrf.mxu1 }
 0x234   :  { %v2056_v34 = vpack.c.bf16 %v1992_v0, %v1992_v0  ;;  %v1817_v33 = vadd.f32 %v3750_v41, %v1749_v43 }
 0x235   :  { %v1733_v46 = vadd.f32 %v1625_v25, %v1404_v20 }
 0x236   :  { %2121 = vst.msk [vmem:[%s3969_s4 + $0x88] sm:$0xf] %vm2086_vm6, %v2056_v34  ;;  %vm1881_vm7 = vcmp.gt.f32.partialorder %v1817_v33, 0.0  ;;  %v1945_v23 = vmul.f32 0.2, %v1817_v33 }
 0x237   :  { %v1801_v4 = vadd.f32 %v3750_v41, %v1733_v46 }
 0x238   :  { %v2009_v10 = vsel %vm1881_vm7, %v1817_v33, %v1945_v23  ;;  %v1628_v15 = vpop.f32.mrf.mxu2 }
 0x239   :  { %v2073_v19 = vpack.c.bf16 %v2009_v10, %v2009_v10  ;;  %vm1865_vm1 = vcmp.gt.f32.partialorder %v1801_v4, 0.0  ;;  %v1929_v18 = vmul.f32 0.2, %v1801_v4  ;;  %v1668_v35 = vpop.f32.mrf.mxu3 }
 0x23a   :  { %v1750_v32 = vadd.f32 %v1668_v35, %v1447_v17  ;;  %v1197_v52 = vpop.f32.mrf.mxu0 }
 0x23b   :  { %2138 = vst.msk [vmem:[%s3969_s4 + $0xcc] sm:$0xf] %vm2086_vm6, %v2073_v19  ;;  %v1993_v36 = vsel %vm1865_vm1, %v1801_v4, %v1929_v18  ;;  %v1407_v39 = vadd.f32 %v1406_v40, %v1197_v52  ;;  %v1408_v31 = vpop.f32.mrf.mxu1  ;;  %v1454_v19 = vadd.f32 %v3666_v62, %v3427_v61 }
 0x23c   :  { %v2057_v22 = vpack.c.bf16 %v1993_v36, %v1993_v36  ;;  %v1818_v29 = vadd.f32 %v3750_v41, %v1750_v32 }
 0x23d   :  { %v1734_v54 = vadd.f32 %v1628_v15, %v1407_v39 }
 0x23e   :  { %2122 = vst.msk [vmem:[%s3969_s4 + $0x8c] sm:$0xf] %vm2086_vm6, %v2057_v22  ;;  %vm1882_vm8 = vcmp.gt.f32.partialorder %v1818_v29, 0.0  ;;  %v1946_v24 = vmul.f32 0.2, %v1818_v29 }
 0x23f   :  { %v1802_v49 = vadd.f32 %v3750_v41, %v1734_v54 }
 0x240   :  { %v2010_v6 = vsel %vm1882_vm8, %v1818_v29, %v1946_v24  ;;  %v1630_v27 = vpop.f32.mrf.mxu2 }
 0x241   :  { %v2074_v2 = vpack.c.bf16 %v2010_v6, %v2010_v6  ;;  %vm1866_vm0 = vcmp.gt.f32.partialorder %v1802_v49, 0.0  ;;  %v1930_v57 = vmul.f32 0.2, %v1802_v49  ;;  %v1670_v9 = vpop.f32.mrf.mxu3  ;;  %v1457_v6 = vadd.f32 %v3679_v47, %v3443_v50 }
 0x242   :  { %v1751_v3 = vadd.f32 %v1670_v9, %v1449_v21  ;;  %v1199_v56 = vpop.f32.mrf.mxu0 }
 0x243   :  { %2139 = vst.msk [vmem:[%s3969_s4 + $0xd0] sm:$0xf] %vm2086_vm6, %v2074_v2  ;;  %v1994_v58 = vsel %vm1866_vm0, %v1802_v49, %v1930_v57  ;;  %v1409_v28 = vadd.f32 %v1408_v31, %v1199_v56  ;;  %v1411_v60 = vpop.f32.mrf.mxu1 }
 0x244   :  { %v2058_v25 = vpack.c.bf16 %v1994_v58, %v1994_v58  ;;  %v1819_v5 = vadd.f32 %v3750_v41, %v1751_v3 }
 0x245   :  { %v1735_v16 = vadd.f32 %v1630_v27, %v1409_v28 }
 0x246   :  { %2123 = vst.msk [vmem:[%s3969_s4 + $0x90] sm:$0xf] %vm2086_vm6, %v2058_v25  ;;  %vm1883_vm9 = vcmp.gt.f32.partialorder %v1819_v5, 0.0  ;;  %v1947_v12 = vmul.f32 0.2, %v1819_v5 }
 0x247   :  { %v1803_v8 = vadd.f32 %v3750_v41, %v1735_v16 }
 0x248   :  { %v2011_v43 = vsel %vm1883_vm9, %v1819_v5, %v1947_v12  ;;  %v1633_v55 = vpop.f32.mrf.mxu2 }
 0x249   :  { %v2075_v0 = vpack.c.bf16 %v2011_v43, %v2011_v43  ;;  %vm1867_vm10 = vcmp.gt.f32.partialorder %v1803_v8, 0.0  ;;  %v1931_v20 = vmul.f32 0.2, %v1803_v8  ;;  %v1673_v40 = vpop.f32.mrf.mxu3 }
 0x24a   :  { %v1752_v34 = vadd.f32 %v1673_v40, %v1452_v14  ;;  %v1202_v33 = vpop.f32.mrf.mxu0 }
 0x24b   :  { %2140 = vst.msk [vmem:[%s3969_s4 + $0xd4] sm:$0xf] %vm2086_vm6, %v2075_v0  ;;  %v1995_v46 = vsel %vm1867_vm10, %v1803_v8, %v1931_v20  ;;  %v1412_v23 = vadd.f32 %v1411_v60, %v1202_v33  ;;  %v1413_v4 = vpop.f32.mrf.mxu1  ;;  %v1459_v8 = vadd.f32 %v3688_v51, %v3457_v11 }
 0x24c   :  { %v2059_v17 = vpack.c.bf16 %v1995_v46, %v1995_v46  ;;  %v1820_v10 = vadd.f32 %v3750_v41, %v1752_v34 }
 0x24d   :  { %v1736_v7 = vadd.f32 %v1633_v55, %v1412_v23 }
 0x24e   :  { %2124 = vst.msk [vmem:[%s3969_s4 + $0x94] sm:$0xf] %vm2086_vm6, %v2059_v17  ;;  %vm1884_vm2 = vcmp.gt.f32.partialorder %v1820_v10, 0.0  ;;  %v1948_v63 = vmul.f32 0.2, %v1820_v10 }
 0x24f   :  { %v1804_v15 = vadd.f32 %v3750_v41, %v1736_v7  ;;  %v1462_v7 = vadd.f32 %v3701_v45, %v3479_v13 }
 0x250   :  { %v2012_v18 = vsel %vm1884_vm2, %v1820_v10, %v1948_v63  ;;  %v1635_v35 = vpop.f32.mrf.mxu2 }
 0x251   :  { %v2076_v32 = vpack.c.bf16 %v2012_v18, %v2012_v18  ;;  %vm1868_vm3 = vcmp.gt.f32.partialorder %v1804_v15, 0.0  ;;  %v1932_v52 = vmul.f32 0.2, %v1804_v15  ;;  %v1675_v36 = vpop.f32.mrf.mxu3 }
 0x252   :  { %v1753_v39 = vadd.f32 %v1675_v36, %v1454_v19  ;;  %v1204_v31 = vpop.f32.mrf.mxu0 }
 0x253   :  { %2141 = vst.msk [vmem:[%s3969_s4 + $0xd8] sm:$0xf] %vm2086_vm6, %v2076_v32  ;;  %v1996_v22 = vsel %vm1868_vm3, %v1804_v15, %v1932_v52  ;;  %v1414_v29 = vadd.f32 %v1413_v4, %v1204_v31  ;;  %v1416_v54 = vpop.f32.mrf.mxu1 }
 0x254   :  { %v2060_v24 = vpack.c.bf16 %v1996_v22, %v1996_v22  ;;  %v1821_v49 = vadd.f32 %v3750_v41, %v1753_v39 }
 0x255   :  { %v1737_v61 = vadd.f32 %v1635_v35, %v1414_v29 }
 0x256   :  { %2125 = vst.msk [vmem:[%s3969_s4 + $0x98] sm:$0xf] %vm2086_vm6, %v2060_v24  ;;  %vm1885_vm4 = vcmp.gt.f32.partialorder %v1821_v49, 0.0  ;;  %v1949_v62 = vmul.f32 0.2, %v1821_v49  ;;  %v1464_v24 = vadd.f32 %v3711_v48, %v3496_v38 }
 0x257   :  { %v1805_v21 = vadd.f32 %v3750_v41, %v1737_v61 }
 0x258   :  { %v2013_v27 = vsel %vm1885_vm4, %v1821_v49, %v1949_v62  ;;  %v1638_v2 = vpop.f32.mrf.mxu2 }
 0x259   :  { %v2077_v57 = vpack.c.bf16 %v2013_v27, %v2013_v27  ;;  %vm1869_vm11 = vcmp.gt.f32.partialorder %v1805_v21, 0.0  ;;  %v1933_v9 = vmul.f32 0.2, %v1805_v21  ;;  %v1678_v3 = vpop.f32.mrf.mxu3 }
 0x25a   :  { %v1754_v56 = vadd.f32 %v1678_v3, %v1457_v6  ;;  %v1207_v58 = vpop.f32.mrf.mxu0 }
 0x25b   :  { %2142 = vst.msk [vmem:[%s3969_s4 + $0xdc] sm:$0xf] %vm2086_vm6, %v2077_v57  ;;  %v1997_v28 = vsel %vm1869_vm11, %v1805_v21, %v1933_v9  ;;  %v1417_v60 = vadd.f32 %v1416_v54, %v1207_v58  ;;  %v1418_v25 = vpop.f32.mrf.mxu1 }
 0x25c   :  { %v2061_v5 = vpack.c.bf16 %v1997_v28, %v1997_v28  ;;  %v1822_v16 = vadd.f32 %v3750_v41, %v1754_v56 }
 0x25d   :  { %v1738_v50 = vadd.f32 %v1638_v2, %v1417_v60  ;;  %v1467_v60 = vadd.f32 %v3724_v42, %v3516_v59 }
 0x25e   :  { %2126 = vst.msk [vmem:[%s3969_s4 + $0x9c] sm:$0xf] %vm2086_vm6, %v2061_v5  ;;  %vm1886_vm12 = vcmp.gt.f32.partialorder %v1822_v16, 0.0  ;;  %v1950_v47 = vmul.f32 0.2, %v1822_v16 }
 0x25f   :  { %v1806_v12 = vadd.f32 %v3750_v41, %v1738_v50 }
 0x260   :  { %v2014_v14 = vsel %vm1886_vm12, %v1822_v16, %v1950_v47  ;;  %v1640_v43 = vpop.f32.mrf.mxu2 }
 0x261   :  { %v2078_v55 = vpack.c.bf16 %v2014_v14, %v2014_v14  ;;  %vm1870_vm13 = vcmp.gt.f32.partialorder %v1806_v12, 0.0  ;;  %v1934_v0 = vmul.f32 0.2, %v1806_v12  ;;  %v1680_v20 = vpop.f32.mrf.mxu3 }
 0x262   :  { %v1755_v40 = vadd.f32 %v1680_v20, %v1459_v8  ;;  %v1209_v34 = vpop.f32.mrf.mxu0 }
 0x263   :  { %2143 = vst.msk [vmem:[%s3969_s4 + $0xe0] sm:$0xf] %vm2086_vm6, %v2078_v55  ;;  %v1998_v33 = vsel %vm1870_vm13, %v1806_v12, %v1934_v0  ;;  %v1419_v46 = vadd.f32 %v1418_v25, %v1209_v34  ;;  %v1421_v23 = vpop.f32.mrf.mxu1  ;;  %v1469_v34 = vadd.f32 %v3735_v37, %v3528_v26 }
 0x264   :  { %v2062_v4 = vpack.c.bf16 %v1998_v33, %v1998_v33  ;;  %v1823_v17 = vadd.f32 %v3750_v41, %v1755_v40 }
 0x265   :  { %v1739_v11 = vadd.f32 %v1640_v43, %v1419_v46 }
 0x266   :  { %2127 = vst.msk [vmem:[%s3969_s4 + $0xa0] sm:$0xf] %vm2086_vm6, %v2062_v4  ;;  %vm1887_vm14 = vcmp.gt.f32.partialorder %v1823_v17, 0.0  ;;  %v1951_v51 = vmul.f32 0.2, %v1823_v17 }
 0x267   :  { %v1807_v10 = vadd.f32 %v3750_v41, %v1739_v11 }
 0x268   :  { %v2015_v63 = vsel %vm1887_vm14, %v1823_v17, %v1951_v51  ;;  %v1643_v15 = vpop.f32.mrf.mxu2 }
 0x269   :  { %v2079_v19 = vpack.c.bf16 %v2015_v63, %v2015_v63  ;;  %vm1871_vm15 = vcmp.gt.f32.partialorder %v1807_v10, 0.0  ;;  %v1935_v18 = vmul.f32 0.2, %v1807_v10  ;;  %v1683_v35 = vpop.f32.mrf.mxu3 }
 0x26a   :  { %v1756_v32 = vadd.f32 %v1683_v35, %v1462_v7  ;;  %v1212_v52 = vpop.f32.mrf.mxu0 }
 0x26b   :  { %2144 = vst.msk [vmem:[%s3969_s4 + $0xe4] sm:$0xf] %vm2086_vm6, %v2079_v19  ;;  %v1999_v36 = vsel %vm1871_vm15, %v1807_v10, %v1935_v18  ;;  %v1422_v39 = vadd.f32 %v1421_v23, %v1212_v52  ;;  %v1423_v31 = vpop.f32.mrf.mxu1  ;;  %v1472_v18 = vadd.f32 %v3753_v53, %v3545_v44 }
 0x26c   :  { %v2063_v22 = vpack.c.bf16 %v1999_v36, %v1999_v36  ;;  %v1824_v29 = vadd.f32 %v3750_v41, %v1756_v32 }
 0x26d   :  { %v1740_v13 = vadd.f32 %v1643_v15, %v1422_v39 }
 0x26e   :  { %2128 = vst.msk [vmem:[%s3969_s4 + $0xa4] sm:$0xf] %vm2086_vm6, %v2063_v22  ;;  %vm1888_vm5 = vcmp.gt.f32.partialorder %v1824_v29, 0.0  ;;  %v1952_v45 = vmul.f32 0.2, %v1824_v29 }
 0x26f   :  { %v1808_v54 = vadd.f32 %v3750_v41, %v1740_v13 }
 0x270   :  { %v2016_v49 = vsel %vm1888_vm5, %v1824_v29, %v1952_v45  ;;  %v1645_v61 = vpop.f32.mrf.mxu2 }
 0x271   :  { %v2080_v62 = vpack.c.bf16 %v2016_v49, %v2016_v49  ;;  %vm1872_vm7 = vcmp.gt.f32.partialorder %v1808_v54, 0.0  ;;  %v1936_v21 = vmul.f32 0.2, %v1808_v54  ;;  %v1685_v6 = vpop.f32.mrf.mxu3 }
 0x272   :  { %v1757_v27 = vadd.f32 %v1685_v6, %v1464_v24  ;;  %v1214_v2 = vpop.f32.mrf.mxu0 }
 0x273   :  { %2145 = vst.msk [vmem:[%s3969_s4 + $0xe8] sm:$0xf] %vm2086_vm6, %v2080_v62  ;;  %v2000_v57 = vsel %vm1872_vm7, %v1808_v54, %v1936_v21  ;;  %v1424_v9 = vadd.f32 %v1423_v31, %v1214_v2  ;;  %v1426_v58 = vpop.f32.mrf.mxu1 }
 0x274   :  { %v2064_v3 = vpack.c.bf16 %v2000_v57, %v2000_v57  ;;  %v1825_v56 = vadd.f32 %v3750_v41, %v1757_v27 }
 0x275   :  { %v1741_v38 = vadd.f32 %v1645_v61, %v1424_v9  ;;  %v1474_v61 = vadd.f32 %v3762_v30, %v3560_v1 }
 0x276   :  { %2129 = vst.msk [vmem:[%s3969_s4 + $0xa8] sm:$0xf] %vm2086_vm6, %v2064_v3  ;;  %vm1889_vm1 = vcmp.gt.f32.partialorder %v1825_v56, 0.0  ;;  %v1953_v48 = vmul.f32 0.2, %v1825_v56 }
 0x277   :  { %v1809_v28 = vadd.f32 %v3750_v41, %v1741_v38 }
 0x278   :  { %v2017_v25 = vsel %vm1889_vm1, %v1825_v56, %v1953_v48  ;;  %v1648_v5 = vpop.f32.mrf.mxu2 }
 0x279   :  { %v2081_v16 = vpack.c.bf16 %v2017_v25, %v2017_v25  ;;  %vm1873_vm8 = vcmp.gt.f32.partialorder %v1809_v28, 0.0  ;;  %v1937_v50 = vmul.f32 0.2, %v1809_v28  ;;  %v1688_v47 = vpop.f32.mrf.mxu3 }
 0x27a   :  { %v1758_v12 = vadd.f32 %v1688_v47, %v1467_v60  ;;  %v1217_v8 = vpop.f32.mrf.mxu0 }
 0x27b   :  { %2146 = vst.msk [vmem:[%s3969_s4 + $0xec] sm:$0xf] %vm2086_vm6, %v2081_v16  ;;  %v2001_v14 = vsel %vm1873_vm8, %v1809_v28, %v1937_v50  ;;  %v1427_v43 = vadd.f32 %v1426_v58, %v1217_v8  ;;  %v1428_v42 = vpop.f32.mrf.mxu1 }
 0x27c   :  { %v2065_v55 = vpack.c.bf16 %v2001_v14, %v2001_v14  ;;  %v1826_v0 = vadd.f32 %v3750_v41, %v1758_v12 }
 0x27d   :  { %v1742_v20 = vadd.f32 %v1648_v5, %v1427_v43 }
 0x27e   :  { %2130 = vst.msk [vmem:[%s3969_s4 + $0xac] sm:$0xf] %vm2086_vm6, %v2065_v55  ;;  %vm1890_vm0 = vcmp.gt.f32.partialorder %v1826_v0, 0.0  ;;  %v1954_v59 = vmul.f32 0.2, %v1826_v0 }
 0x27f   :  { %v1810_v40 = vadd.f32 %v3750_v41, %v1742_v20 }
 0x280   :  { %v2018_v33 = vsel %vm1890_vm0, %v1826_v0, %v1954_v59  ;;  %v1650_v46 = vpop.f32.mrf.mxu2 }
 0x281   :  { %v2082_v23 = vpack.c.bf16 %v2018_v33, %v2018_v33  ;;  %vm1874_vm9 = vcmp.gt.f32.partialorder %v1810_v40, 0.0  ;;  %v1938_v4 = vmul.f32 0.2, %v1810_v40  ;;  %v1690_v17 = vpop.f32.mrf.mxu3 }
 0x282   :  { %v1759_v11 = vadd.f32 %v1690_v17, %v1469_v34  ;;  %v1219_v51 = vpop.f32.mrf.mxu0 }
 0x283   :  { %2147 = vst.msk [vmem:[%s3969_s4 + $0xf0] sm:$0xf] %vm2086_vm6, %v2082_v23  ;;  %v2002_v10 = vsel %vm1874_vm9, %v1810_v40, %v1938_v4  ;;  %v1429_v7 = vadd.f32 %v1428_v42, %v1219_v51  ;;  %v1431_v32 = vpop.f32.mrf.mxu1 }
 0x284   :  { %v2066_v63 = vpack.c.bf16 %v2002_v10, %v2002_v10  ;;  %v1827_v15 = vadd.f32 %v3750_v41, %v1759_v11 }
 0x285   :  { %v1743_v19 = vadd.f32 %v1650_v46, %v1429_v7 }
 0x286   :  { %2131 = vst.msk [vmem:[%s3969_s4 + $0xb0] sm:$0xf] %vm2086_vm6, %v2066_v63  ;;  %vm1891_vm10 = vcmp.gt.f32.partialorder %v1827_v15, 0.0  ;;  %v1955_v26 = vmul.f32 0.2, %v1827_v15 }
 0x287   :  { %v1811_v37 = vadd.f32 %v3750_v41, %v1743_v19 }
 0x288   :  { %v2019_v35 = vsel %vm1891_vm10, %v1827_v15, %v1955_v26  ;;  %v1653_v31 = vpop.f32.mrf.mxu2 }
 0x289   :  { %v2083_v52 = vpack.c.bf16 %v2019_v35, %v2019_v35  ;;  %vm1875_vm2 = vcmp.gt.f32.partialorder %v1811_v37, 0.0  ;;  %v1939_v36 = vmul.f32 0.2, %v1811_v37  ;;  %v1693_v39 = vpop.f32.mrf.mxu3 }
 0x28a   :  { %v1760_v22 = vadd.f32 %v1693_v39, %v1472_v18  ;;  %v1222_v29 = vpop.f32.mrf.mxu0 }
 0x28b   :  { %2148 = vst.msk [vmem:[%s3969_s4 + $0xf4] sm:$0xf] %vm2086_vm6, %v2083_v52  ;;  %v2003_v13 = vsel %vm1875_vm2, %v1811_v37, %v1939_v36  ;;  %v1432_v45 = vadd.f32 %v1431_v32, %v1222_v29  ;;  %v1433_v2 = vpop.f32.mrf.mxu1 }
 0x28c   :  { %v2067_v54 = vpack.c.bf16 %v2003_v13, %v2003_v13  ;;  %v1828_v24 = vadd.f32 %v3750_v41, %v1760_v22 }
 0x28d   :  { %v1744_v44 = vadd.f32 %v1653_v31, %v1432_v45 }
 0x28e   :  { %2132 = vst.msk [vmem:[%s3969_s4 + $0xb4] sm:$0xf] %vm2086_vm6, %v2067_v54  ;;  %vm1892_vm3 = vcmp.gt.f32.partialorder %v1828_v24, 0.0  ;;  %v1956_v53 = vmul.f32 0.2, %v1828_v24 }
 0x28f   :  { %v1812_v49 = vadd.f32 %v3750_v41, %v1744_v44 }
 0x290   :  { %v2020_v62 = vsel %vm1892_vm3, %v1828_v24, %v1956_v53  ;;  %v1655_v38 = vpop.f32.mrf.mxu2 }
 0x291   :  { %v2084_v21 = vpack.c.bf16 %v2020_v62, %v2020_v62  ;;  %vm1876_vm4 = vcmp.gt.f32.partialorder %v1812_v49, 0.0  ;;  %v1940_v6 = vmul.f32 0.2, %v1812_v49  ;;  %v1695_v27 = vpop.f32.mrf.mxu3 }
 0x292   :  { %v1761_v57 = vadd.f32 %v1695_v27, %v1474_v61  ;;  %v1224_v9 = vpop.f32.mrf.mxu0 }
 0x293   :  { %2149 = vst.msk [vmem:[%s3969_s4 + $0xf8] sm:$0xf] %vm2086_vm6, %v2084_v21  ;;  %v2004_v3 = vsel %vm1876_vm4, %v1812_v49, %v1940_v6  ;;  %v1434_v56 = vadd.f32 %v1433_v2, %v1224_v9 }
 0x294   :  { %v2068_v58 = vpack.c.bf16 %v2004_v3, %v2004_v3  ;;  %v1829_v48 = vadd.f32 %v3750_v41, %v1761_v57 }
 0x295   :  { %v1745_v1 = vadd.f32 %v1655_v38, %v1434_v56 }
 0x296   :  { %2133 = vst.msk [vmem:[%s3969_s4 + $0xb8] sm:$0xf] %vm2086_vm6, %v2068_v58  ;;  %vm1893_vm11 = vcmp.gt.f32.partialorder %v1829_v48, 0.0  ;;  %v1957_v30 = vmul.f32 0.2, %v1829_v48 }
 0x297   :  { %v1813_v28 = vadd.f32 %v3750_v41, %v1745_v1 }
 0x298   :  { %v2021_v60 = vsel %vm1893_vm11, %v1829_v48, %v1957_v30 }
 0x299   :  { %v2085_v25 = vpack.c.bf16 %v2021_v60, %v2021_v60  ;;  %vm1877_vm12 = vcmp.gt.f32.partialorder %v1813_v28, 0.0  ;;  %v1941_v5 = vmul.f32 0.2, %v1813_v28 }
 0x29b   :  { %2150 = vst.msk [vmem:[%s3969_s4 + $0xfc] sm:$0xf] %vm2086_vm6, %v2085_v25  ;;  %v2005_v16 = vsel %vm1877_vm12, %v1813_v28, %v1941_v5 }
 0x29c   :  { %v2069_v50 = vpack.c.bf16 %v2005_v16, %v2005_v16 }
 0x29e   :  { %2134 = vst.msk [vmem:[%s3969_s4 + $0xbc] sm:$0xf] %vm2086_vm6, %v2069_v50 }
 0x29f   :  { %2155 = vsyncpa [#allocation3], 1 }
 0x2a0   :  { %2156 = vsyncpa [#allocation5], 1 }

</bundles_post_ra>
